<compile_context>
chip_gen: v6e
topology: v6e:2x2x1
jax: 0.10.0
libtpu: 0.0.40
codegen_flags: <defaults>
</compile_context>

<pallas_src>
import jax
import jax.numpy as jnp
from jax import lax
from jax.experimental import pallas as pl
from jax.experimental.pallas import tpu as pltpu


# -----------------------------------------------------------------------------
# Wrapper + kernel (kernel is a closure so N, W, HW, se_hidden, skip are static)
# -----------------------------------------------------------------------------
def mbconv_pallas(x_nchw, params, *, stride=1):
    N, Cin, H, W = x_nchw.shape
    HW = H * W
    hidden = params["w_exp"].shape[1]
    Cout = params["w_proj"].shape[1]
    se_hidden = params["w_se1"].shape[1]
    assert stride == 1, "TODO(synk): stride > 1 not implemented"
    use_skip = (stride == 1) and (Cin == Cout)

    # ---- fold BN scales into conv weights; lay out as (out_ch, in_ch) -------
    w_exp_k = (params["w_exp"] * params["bn1_scale"]).T        # (hidden, Cin)
    w_dw_k = (params["w_dw"] * params["bn2_scale"]).T          # (hidden, 9)
    w_proj_k = (params["w_proj"] * params["bn3_scale"]).T      # (Cout, hidden)
    bn3b_k = params["bn3_shift"].T                             # (Cout, 1)

    # ---- pack the per-hidden-channel aux data into ONE small operand --------
    # cols: [bn1_shift | bn2_shift | w_se1 (se cols) | w_se2^T (se cols)]
    aux_k = jnp.concatenate(
        [params["bn1_shift"].T,                                # (hidden, 1)
         params["bn2_shift"].T,                                # (hidden, 1)
         params["w_se1"],                                      # (hidden, se)
         params["w_se2"].T],                                   # (hidden, se)
        axis=1)                                                # (hidden, 2 + 2*se)

    # ---- precompute the depthwise-conv edge masks once (multiplicative) -----
    lane = jnp.arange(HW, dtype=jnp.int32)
    wcol = lane % W
    masks_k = jnp.stack(
        [(wcol != 0),            # keep h[., w-1] (zero at left edge)
         (wcol != W - 1),        # keep h[., w+1] (zero at right edge)
         (lane >= W),            # keep dy = -1 row (zero at top row)
         (lane < HW - W)],       # keep dy = +1 row (zero at bottom row)
        axis=0).astype(jnp.float32)                            # (4, HW)

    x_flat = x_nchw.reshape(N, Cin, HW)                        # free reshape (NCHW contiguous)

    def kernel(x_ref, w_exp_ref, w_dw_ref, w_proj_ref, aux_ref, bn3b_ref,
               masks_ref, o_ref):
        # ---- load shared weights / masks once, reuse for every image --------
        w_exp = w_exp_ref[...]                                 # (hidden, Cin)
        wdw = w_dw_ref[...]                                    # (hidden, 9), BN2-scaled taps
        w_proj = w_proj_ref[...]                               # (Cout, hidden)
        aux = aux_ref[...]                                     # (hidden, 2 + 2*se)
        bn1b = aux[:, 0:1]                                     # (hidden, 1)
        bn2b = aux[:, 1:2]                                     # (hidden, 1)
        w_se1 = aux[:, 2:2 + se_hidden]                        # (hidden, se)
        w_se2 = aux[:, 2 + se_hidden:2 + 2 * se_hidden]        # (hidden, se)
        bn3b = bn3b_ref[...]                                   # (Cout, 1)
        masks = masks_ref[...]                                 # (4, HW)
        m_l = masks[0:1, :]                                    # (1, HW) sublane-broadcast
        m_r = masks[1:2, :]
        m_t = masks[2:3, :]
        m_b = masks[3:4, :]

        # ---- static unroll over images: one grid step total ------------------
        for n in range(N):
            x = x_ref[n].astype(jnp.float32)                   # (Cin, HW), lane-dense

            # 1x1 expand conv (BN1 scale folded) + BN1 shift + SiLU
            h = jnp.dot(w_exp, x, preferred_element_type=jnp.float32)   # (hidden, HW)
            h = h + bn1b
            h = h * jax.nn.sigmoid(h)

            # 3x3 depthwise conv via XLU lane rolls + precomputed edge masks
            h_m1 = pltpu.roll(h, shift=1, axis=1) * m_l        # h[., w-1]
            h_p1 = pltpu.roll(h, shift=HW - 1, axis=1) * m_r   # h[., w+1]

            def row_sum(dyi):                                  # sum over dx for one dy row
                return (h_m1 * wdw[:, 3 * dyi + 0:3 * dyi + 1]
                        + h * wdw[:, 3 * dyi + 1:3 * dyi + 2]
                        + h_p1 * wdw[:, 3 * dyi + 2:3 * dyi + 3])

            d = row_sum(1)                                                     # dy = 0
            d = d + pltpu.roll(row_sum(0), shift=W, axis=1) * m_t              # dy = -1
            d = d + pltpu.roll(row_sum(2), shift=HW - W, axis=1) * m_b         # dy = +1
            d = d + bn2b
            d = d * jax.nn.sigmoid(d)                          # SiLU, (hidden, HW)

            # Squeeze-and-Excitation: pool + tiny FCs as VPU/XLU reductions
            pooled = jnp.mean(d, axis=1, keepdims=True)                        # (hidden, 1)
            s1 = jnp.sum(pooled * w_se1, axis=0, keepdims=True)                # (1, se)
            s1 = jnp.maximum(s1, 0.0)                                          # ReLU
            s2 = jax.nn.sigmoid(
                jnp.sum(w_se2 * s1, axis=1, keepdims=True))                    # (hidden, 1)
            d = d * s2

            # 1x1 project conv (BN3 scale folded) + shift + residual skip
            o = jnp.dot(w_proj, d, preferred_element_type=jnp.float32)         # (Cout, HW)
            o = o + bn3b
            if use_skip:
                o = o + x
            o_ref[n] = o.astype(o_ref.dtype)

    full2 = lambda i: (0, 0)
    full3 = lambda i: (0, 0, 0)
    in_specs = [
        pl.BlockSpec((N, Cin, HW), full3),                     # x (whole batch, lane-dense)
        pl.BlockSpec((hidden, Cin), full2),                    # expand weight
        pl.BlockSpec((hidden, 9), full2),                      # depthwise taps
        pl.BlockSpec((Cout, hidden), full2),                   # project weight
        pl.BlockSpec((hidden, 2 + 2 * se_hidden), full2),      # packed bn shifts + SE weights
        pl.BlockSpec((Cout, 1), full2),                        # bn3 shift
        pl.BlockSpec((4, HW), full2),                          # precomputed edge masks
    ]
    out_specs = pl.BlockSpec((N, Cout, HW), full3)

    out_flat = pl.pallas_call(
        kernel,
        out_shape=jax.ShapeDtypeStruct((N, Cout, HW), jnp.float32),
        grid_spec=pltpu.PrefetchScalarGridSpec(
            num_scalar_prefetch=0,
            grid=(1,),                                         # single step: no per-step overhead
            in_specs=in_specs,
            out_specs=out_specs,
        ),
        compiler_params=pltpu.CompilerParams(
            dimension_semantics=("arbitrary",)),
    )(x_flat, w_exp_k, w_dw_k, w_proj_k, aux_k, bn3b_k, masks_k)

    return out_flat.reshape(N, Cout, H, W)                     # free reshape back to NCHW


# -----------------------------------------------------------------------------
# Pure-JAX reference (independent of the kernel's algorithm) for verification
# -----------------------------------------------------------------------------
def ref_forward(x_nhwc, params):
    dn = ("NHWC", "HWIO", "NHWC")
    N, H, W, Cin = x_nhwc.shape
    hidden = params["w_exp"].shape[1]
    Cout = params["w_proj"].shape[1]

    h = lax.conv_general_dilated(
        x_nhwc, params["w_exp"].reshape(1, 1, Cin, hidden),
        (1, 1), "VALID", dimension_numbers=dn)
    h = h * params["bn1_scale"].reshape(1, 1, 1, -1) + params["bn1_shift"].reshape(1, 1, 1, -1)
    h = h * jax.nn.sigmoid(h)

    wdw = params["w_dw"].reshape(3, 3, hidden)[:, :, None, :]   # HWIO, I=1
    d = lax.conv_general_dilated(
        h, wdw, (1, 1), ((1, 1), (1, 1)),
        dimension_numbers=dn, feature_group_count=hidden)
    d = d * params["bn2_scale"].reshape(1, 1, 1, -1) + params["bn2_shift"].reshape(1, 1, 1, -1)
    d = d * jax.nn.sigmoid(d)

    pooled = jnp.mean(d, axis=(1, 2))                           # (N, hidden)
    s = jnp.maximum(pooled @ params["w_se1"], 0.0)
    s = jax.nn.sigmoid(s @ params["w_se2"])
    d = d * s[:, None, None, :]

    o = lax.conv_general_dilated(
        d, params["w_proj"].reshape(1, 1, hidden, Cout),
        (1, 1), "VALID", dimension_numbers=dn)
    o = o * params["bn3_scale"].reshape(1, 1, 1, -1) + params["bn3_shift"].reshape(1, 1, 1, -1)
    return o + x_nhwc


def make_folded_bn(key, c, eps=1e-5):
    k1, k2, k3, k4 = jax.random.split(key, 4)
    gamma = 1.0 + 0.1 * jax.random.normal(k1, (c,), jnp.float32)
    beta = 0.1 * jax.random.normal(k2, (c,), jnp.float32)
    mean = 0.1 * jax.random.normal(k3, (c,), jnp.float32)
    var = jnp.abs(jax.random.normal(k4, (c,), jnp.float32)) + 0.5
    scale = gamma / jnp.sqrt(var + eps)
    shift = beta - mean * scale
    return scale.reshape(1, c), shift.reshape(1, c)


if __name__ == "__main__":
    # MBConvBlock(in_channels=8, out_channels=8, expand_ratio=4, stride=1, use_se=True)
    N, Cin, H, W = 2, 8, 16, 16
    expand_ratio = 4
    Cout = 8
    reduction = 16
    hidden = int(Cin * expand_ratio)          # 32
    se_hidden = hidden // reduction           # 2

    key = jax.random.PRNGKey(0)
    ks = jax.random.split(key, 10)

    x_nchw = jax.random.normal(ks[0], (N, Cin, H, W), jnp.float32)

    bn1_scale, bn1_shift = make_folded_bn(ks[1], hidden)
    bn2_scale, bn2_shift = make_folded_bn(ks[2], hidden)
    bn3_scale, bn3_shift = make_folded_bn(ks[3], Cout)

    params = dict(
        w_exp=0.1 * jax.random.normal(ks[4], (Cin, hidden), jnp.float32),
        bn1_scale=bn1_scale, bn1_shift=bn1_shift,
        w_dw=0.1 * jax.random.normal(ks[5], (9, hidden), jnp.float32),
        bn2_scale=bn2_scale, bn2_shift=bn2_shift,
        w_se1=0.1 * jax.random.normal(ks[6], (hidden, se_hidden), jnp.float32),
        w_se2=0.1 * jax.random.normal(ks[7], (se_hidden, hidden), jnp.float32),
        w_proj=0.1 * jax.random.normal(ks[8], (hidden, Cout), jnp.float32),
        bn3_scale=bn3_scale, bn3_shift=bn3_shift,
    )

    # kernel path: NCHW straight in, NCHW straight out (no transposes)
    out_nchw = mbconv_pallas(x_nchw, params, stride=1)
    jax.block_until_ready(out_nchw)

    # reference path (layout cost irrelevant here)
    x_nhwc = jnp.transpose(x_nchw, (0, 2, 3, 1))
    ref_nchw = jnp.transpose(ref_forward(x_nhwc, params), (0, 3, 1, 2))

    assert out_nchw.shape == (N, Cout, H, W)
    assert jnp.allclose(out_nchw, ref_nchw, atol=1e-3, rtol=1e-3), (
        float(jnp.max(jnp.abs(out_nchw - ref_nchw))))

    print("KERNEL_OK")
</pallas_src>

<mosaic_0001>
module attributes {stable_mosaic.version = 11 : i64} {
  func.func @kernel(%arg0: i32, %arg1: memref<2x8x256xf32, #tpu.memory_space<vmem>>, %arg2: memref<32x8xf32, #tpu.memory_space<vmem>>, %arg3: memref<32x9xf32, #tpu.memory_space<vmem>>, %arg4: memref<8x32xf32, #tpu.memory_space<vmem>>, %arg5: memref<32x6xf32, #tpu.memory_space<vmem>>, %arg6: memref<8x1xf32, #tpu.memory_space<vmem>>, %arg7: memref<4x256xf32, #tpu.memory_space<vmem>>, %arg8: memref<2x8x256xf32, #tpu.memory_space<vmem>>) attributes {dimension_semantics = [#tpu.dimension_semantics<arbitrary>], iteration_bounds = array<i64: 1>, scalar_prefetch = 0 : i64, scratch_operands = 0 : i64, tpu.core_type = #tpu.core_type<tc>, window_params = [{pipeline_mode = #tpu.pipeline_mode<synchronous>, transform_indices = @transform_0, window_bounds = array<i64: 2, 8, 256>}, {pipeline_mode = #tpu.pipeline_mode<synchronous>, transform_indices = @transform_1, window_bounds = array<i64: 32, 8>}, {pipeline_mode = #tpu.pipeline_mode<synchronous>, transform_indices = @transform_2, window_bounds = array<i64: 32, 9>}, {pipeline_mode = #tpu.pipeline_mode<synchronous>, transform_indices = @transform_3, window_bounds = array<i64: 8, 32>}, {pipeline_mode = #tpu.pipeline_mode<synchronous>, transform_indices = @transform_4, window_bounds = array<i64: 32, 6>}, {pipeline_mode = #tpu.pipeline_mode<synchronous>, transform_indices = @transform_5, window_bounds = array<i64: 8, 1>}, {pipeline_mode = #tpu.pipeline_mode<synchronous>, transform_indices = @transform_6, window_bounds = array<i64: 4, 256>}, {pipeline_mode = #tpu.pipeline_mode<synchronous>, transform_indices = @transform_7, window_bounds = array<i64: 2, 8, 256>}]} {
    %c0 = arith.constant 0 : index
    %c0_0 = arith.constant 0 : index
    %0 = vector.load %arg2[%c0, %c0_0] : memref<32x8xf32, #tpu.memory_space<vmem>>, vector<32x8xf32>
    %c0_1 = arith.constant 0 : index
    %c0_2 = arith.constant 0 : index
    %1 = vector.load %arg3[%c0_1, %c0_2] : memref<32x9xf32, #tpu.memory_space<vmem>>, vector<32x9xf32>
    %c0_3 = arith.constant 0 : index
    %c0_4 = arith.constant 0 : index
    %2 = vector.load %arg4[%c0_3, %c0_4] : memref<8x32xf32, #tpu.memory_space<vmem>>, vector<8x32xf32>
    %c0_5 = arith.constant 0 : index
    %c0_6 = arith.constant 0 : index
    %3 = vector.load %arg5[%c0_5, %c0_6] : memref<32x6xf32, #tpu.memory_space<vmem>>, vector<32x6xf32>
    %4 = vector.extract_strided_slice %3 {offsets = [0, 0], sizes = [32, 1], strides = [1, 1]} : vector<32x6xf32> to vector<32x1xf32>
    %5 = vector.extract_strided_slice %3 {offsets = [0, 1], sizes = [32, 1], strides = [1, 1]} : vector<32x6xf32> to vector<32x1xf32>
    %6 = vector.extract_strided_slice %3 {offsets = [0, 2], sizes = [32, 2], strides = [1, 1]} : vector<32x6xf32> to vector<32x2xf32>
    %7 = vector.extract_strided_slice %3 {offsets = [0, 4], sizes = [32, 2], strides = [1, 1]} : vector<32x6xf32> to vector<32x2xf32>
    %c0_7 = arith.constant 0 : index
    %c0_8 = arith.constant 0 : index
    %8 = vector.load %arg6[%c0_7, %c0_8] : memref<8x1xf32, #tpu.memory_space<vmem>>, vector<8x1xf32>
    %c0_9 = arith.constant 0 : index
    %c0_10 = arith.constant 0 : index
    %9 = vector.load %arg7[%c0_9, %c0_10] : memref<4x256xf32, #tpu.memory_space<vmem>>, vector<4x256xf32>
    %10 = vector.extract_strided_slice %9 {offsets = [0, 0], sizes = [1, 256], strides = [1, 1]} : vector<4x256xf32> to vector<1x256xf32>
    %11 = vector.extract_strided_slice %9 {offsets = [1, 0], sizes = [1, 256], strides = [1, 1]} : vector<4x256xf32> to vector<1x256xf32>
    %12 = vector.extract_strided_slice %9 {offsets = [2, 0], sizes = [1, 256], strides = [1, 1]} : vector<4x256xf32> to vector<1x256xf32>
    %13 = vector.extract_strided_slice %9 {offsets = [3, 0], sizes = [1, 256], strides = [1, 1]} : vector<4x256xf32> to vector<1x256xf32>
    %c0_11 = arith.constant 0 : index
    %c0_12 = arith.constant 0 : index
    %c0_13 = arith.constant 0 : index
    %14 = vector.load %arg1[%c0_11, %c0_12, %c0_13] : memref<2x8x256xf32, #tpu.memory_space<vmem>>, vector<1x8x256xf32>
    %15 = vector.shape_cast %14 : vector<1x8x256xf32> to vector<8x256xf32>
    %cst = arith.constant dense<0.000000e+00> : vector<32x256xf32>
    %16 = tpu.matmul %0, %15, %cst {dimension_numbers = #tpu.dot_dimension_numbers<[1], [0], [0], [1], [0, 0, 1, 1], [], []>} : vector<32x8xf32>, vector<8x256xf32>, vector<32x256xf32> -> vector<32x256xf32>
    %17 = vector.broadcast %4 : vector<32x1xf32> to vector<32x256xf32>
    %18 = arith.addf %16, %17 : vector<32x256xf32>
    %19 = arith.negf %18 : vector<32x256xf32>
    %20 = math.exp %19 : vector<32x256xf32>
    %cst_14 = arith.constant 1.000000e+00 : f32
    %21 = vector.broadcast %cst_14 : f32 to vector<32x256xf32>
    %22 = arith.addf %21, %20 : vector<32x256xf32>
    %23 = arith.divf %21, %22 : vector<32x256xf32>
    %24 = arith.mulf %18, %23 : vector<32x256xf32>
    %c1_i32 = arith.constant 1 : i32
    %25 = tpu.dynamic_rotate %24 by %c1_i32 dim 1 : vector<32x256xf32>, i32 -> vector<32x256xf32>
    %26 = vector.broadcast %10 : vector<1x256xf32> to vector<32x256xf32>
    %27 = arith.mulf %25, %26 : vector<32x256xf32>
    %c255_i32 = arith.constant 255 : i32
    %28 = tpu.dynamic_rotate %24 by %c255_i32 dim 1 : vector<32x256xf32>, i32 -> vector<32x256xf32>
    %29 = vector.broadcast %11 : vector<1x256xf32> to vector<32x256xf32>
    %30 = arith.mulf %28, %29 : vector<32x256xf32>
    %31 = vector.extract_strided_slice %1 {offsets = [0, 3], sizes = [32, 1], strides = [1, 1]} : vector<32x9xf32> to vector<32x1xf32>
    %32 = vector.broadcast %31 : vector<32x1xf32> to vector<32x256xf32>
    %33 = arith.mulf %27, %32 : vector<32x256xf32>
    %34 = vector.extract_strided_slice %1 {offsets = [0, 4], sizes = [32, 1], strides = [1, 1]} : vector<32x9xf32> to vector<32x1xf32>
    %35 = vector.broadcast %34 : vector<32x1xf32> to vector<32x256xf32>
    %36 = arith.mulf %24, %35 : vector<32x256xf32>
    %37 = arith.addf %33, %36 : vector<32x256xf32>
    %38 = vector.extract_strided_slice %1 {offsets = [0, 5], sizes = [32, 1], strides = [1, 1]} : vector<32x9xf32> to vector<32x1xf32>
    %39 = vector.broadcast %38 : vector<32x1xf32> to vector<32x256xf32>
    %40 = arith.mulf %30, %39 : vector<32x256xf32>
    %41 = arith.addf %37, %40 : vector<32x256xf32>
    %42 = vector.extract_strided_slice %1 {offsets = [0, 0], sizes = [32, 1], strides = [1, 1]} : vector<32x9xf32> to vector<32x1xf32>
    %43 = vector.broadcast %42 : vector<32x1xf32> to vector<32x256xf32>
    %44 = arith.mulf %27, %43 : vector<32x256xf32>
    %45 = vector.extract_strided_slice %1 {offsets = [0, 1], sizes = [32, 1], strides = [1, 1]} : vector<32x9xf32> to vector<32x1xf32>
    %46 = vector.broadcast %45 : vector<32x1xf32> to vector<32x256xf32>
    %47 = arith.mulf %24, %46 : vector<32x256xf32>
    %48 = arith.addf %44, %47 : vector<32x256xf32>
    %49 = vector.extract_strided_slice %1 {offsets = [0, 2], sizes = [32, 1], strides = [1, 1]} : vector<32x9xf32> to vector<32x1xf32>
    %50 = vector.broadcast %49 : vector<32x1xf32> to vector<32x256xf32>
    %51 = arith.mulf %30, %50 : vector<32x256xf32>
    %52 = arith.addf %48, %51 : vector<32x256xf32>
    %c16_i32 = arith.constant 16 : i32
    %53 = tpu.dynamic_rotate %52 by %c16_i32 dim 1 : vector<32x256xf32>, i32 -> vector<32x256xf32>
    %54 = vector.broadcast %12 : vector<1x256xf32> to vector<32x256xf32>
    %55 = arith.mulf %53, %54 : vector<32x256xf32>
    %56 = arith.addf %41, %55 : vector<32x256xf32>
    %57 = vector.extract_strided_slice %1 {offsets = [0, 6], sizes = [32, 1], strides = [1, 1]} : vector<32x9xf32> to vector<32x1xf32>
    %58 = vector.broadcast %57 : vector<32x1xf32> to vector<32x256xf32>
    %59 = arith.mulf %27, %58 : vector<32x256xf32>
    %60 = vector.extract_strided_slice %1 {offsets = [0, 7], sizes = [32, 1], strides = [1, 1]} : vector<32x9xf32> to vector<32x1xf32>
    %61 = vector.broadcast %60 : vector<32x1xf32> to vector<32x256xf32>
    %62 = arith.mulf %24, %61 : vector<32x256xf32>
    %63 = arith.addf %59, %62 : vector<32x256xf32>
    %64 = vector.extract_strided_slice %1 {offsets = [0, 8], sizes = [32, 1], strides = [1, 1]} : vector<32x9xf32> to vector<32x1xf32>
    %65 = vector.broadcast %64 : vector<32x1xf32> to vector<32x256xf32>
    %66 = arith.mulf %30, %65 : vector<32x256xf32>
    %67 = arith.addf %63, %66 : vector<32x256xf32>
    %c240_i32 = arith.constant 240 : i32
    %68 = tpu.dynamic_rotate %67 by %c240_i32 dim 1 : vector<32x256xf32>, i32 -> vector<32x256xf32>
    %69 = vector.broadcast %13 : vector<1x256xf32> to vector<32x256xf32>
    %70 = arith.mulf %68, %69 : vector<32x256xf32>
    %71 = arith.addf %56, %70 : vector<32x256xf32>
    %72 = vector.broadcast %5 : vector<32x1xf32> to vector<32x256xf32>
    %73 = arith.addf %71, %72 : vector<32x256xf32>
    %74 = arith.negf %73 : vector<32x256xf32>
    %75 = math.exp %74 : vector<32x256xf32>
    %cst_15 = arith.constant 1.000000e+00 : f32
    %76 = vector.broadcast %cst_15 : f32 to vector<32x256xf32>
    %77 = arith.addf %76, %75 : vector<32x256xf32>
    %78 = arith.divf %76, %77 : vector<32x256xf32>
    %79 = arith.mulf %73, %78 : vector<32x256xf32>
    %cst_16 = arith.constant dense<0.000000e+00> : vector<32xf32>
    %80 = vector.multi_reduction <add>, %79, %cst_16 [1] : vector<32x256xf32> to vector<32xf32>
    %81 = vector.shape_cast %80 : vector<32xf32> to vector<32x1xf32>
    %cst_17 = arith.constant 2.560000e+02 : f32
    %82 = vector.broadcast %cst_17 : f32 to vector<32x1xf32>
    %83 = arith.divf %81, %82 : vector<32x1xf32>
    %84 = vector.broadcast %83 : vector<32x1xf32> to vector<32x2xf32>
    %85 = arith.mulf %84, %6 : vector<32x2xf32>
    %cst_18 = arith.constant dense<0.000000e+00> : vector<2xf32>
    %86 = vector.multi_reduction <add>, %85, %cst_18 [0] : vector<32x2xf32> to vector<2xf32>
    %87 = vector.shape_cast %86 : vector<2xf32> to vector<1x2xf32>
    %cst_19 = arith.constant 0.000000e+00 : f32
    %88 = vector.broadcast %cst_19 : f32 to vector<1x2xf32>
    %89 = arith.maximumf %87, %88 : vector<1x2xf32>
    %90 = vector.broadcast %89 : vector<1x2xf32> to vector<32x2xf32>
    %91 = arith.mulf %7, %90 : vector<32x2xf32>
    %cst_20 = arith.constant dense<0.000000e+00> : vector<32xf32>
    %92 = vector.multi_reduction <add>, %91, %cst_20 [1] : vector<32x2xf32> to vector<32xf32>
    %93 = vector.shape_cast %92 : vector<32xf32> to vector<32x1xf32>
    %94 = arith.negf %93 : vector<32x1xf32>
    %95 = math.exp %94 : vector<32x1xf32>
    %cst_21 = arith.constant 1.000000e+00 : f32
    %96 = vector.broadcast %cst_21 : f32 to vector<32x1xf32>
    %97 = arith.addf %96, %95 : vector<32x1xf32>
    %98 = arith.divf %96, %97 : vector<32x1xf32>
    %99 = vector.broadcast %98 : vector<32x1xf32> to vector<32x256xf32>
    %100 = arith.mulf %79, %99 : vector<32x256xf32>
    %cst_22 = arith.constant dense<0.000000e+00> : vector<8x256xf32>
    %101 = tpu.matmul %2, %100, %cst_22 {dimension_numbers = #tpu.dot_dimension_numbers<[1], [0], [0], [1], [0, 0, 1, 1], [], []>} : vector<8x32xf32>, vector<32x256xf32>, vector<8x256xf32> -> vector<8x256xf32>
    %102 = vector.broadcast %8 : vector<8x1xf32> to vector<8x256xf32>
    %103 = arith.addf %101, %102 : vector<8x256xf32>
    %104 = arith.addf %103, %15 : vector<8x256xf32>
    %c0_23 = arith.constant 0 : index
    %c0_24 = arith.constant 0 : index
    %c0_25 = arith.constant 0 : index
    %105 = vector.load %arg8[%c0_23, %c0_24, %c0_25] : memref<2x8x256xf32, #tpu.memory_space<vmem>>, vector<1x8x256xf32>
    %106 = vector.shape_cast %105 : vector<1x8x256xf32> to vector<8x256xf32>
    %107 = vector.shape_cast %104 : vector<8x256xf32> to vector<1x8x256xf32>
    tpu.vector_store %arg8[%c0_23, %c0_24, %c0_25], %107 {strides = array<i32>} : memref<2x8x256xf32, #tpu.memory_space<vmem>>, vector<1x8x256xf32>,
    %c1 = arith.constant 1 : index
    %c0_26 = arith.constant 0 : index
    %c0_27 = arith.constant 0 : index
    %108 = vector.load %arg1[%c1, %c0_26, %c0_27] : memref<2x8x256xf32, #tpu.memory_space<vmem>>, vector<1x8x256xf32>
    %109 = vector.shape_cast %108 : vector<1x8x256xf32> to vector<8x256xf32>
    %cst_28 = arith.constant dense<0.000000e+00> : vector<32x256xf32>
    %110 = tpu.matmul %0, %109, %cst_28 {dimension_numbers = #tpu.dot_dimension_numbers<[1], [0], [0], [1], [0, 0, 1, 1], [], []>} : vector<32x8xf32>, vector<8x256xf32>, vector<32x256xf32> -> vector<32x256xf32>
    %111 = vector.broadcast %4 : vector<32x1xf32> to vector<32x256xf32>
    %112 = arith.addf %110, %111 : vector<32x256xf32>
    %113 = arith.negf %112 : vector<32x256xf32>
    %114 = math.exp %113 : vector<32x256xf32>
    %cst_29 = arith.constant 1.000000e+00 : f32
    %115 = vector.broadcast %cst_29 : f32 to vector<32x256xf32>
    %116 = arith.addf %115, %114 : vector<32x256xf32>
    %117 = arith.divf %115, %116 : vector<32x256xf32>
    %118 = arith.mulf %112, %117 : vector<32x256xf32>
    %c1_i32_30 = arith.constant 1 : i32
    %119 = tpu.dynamic_rotate %118 by %c1_i32_30 dim 1 : vector<32x256xf32>, i32 -> vector<32x256xf32>
    %120 = vector.broadcast %10 : vector<1x256xf32> to vector<32x256xf32>
    %121 = arith.mulf %119, %120 : vector<32x256xf32>
    %c255_i32_31 = arith.constant 255 : i32
    %122 = tpu.dynamic_rotate %118 by %c255_i32_31 dim 1 : vector<32x256xf32>, i32 -> vector<32x256xf32>
    %123 = vector.broadcast %11 : vector<1x256xf32> to vector<32x256xf32>
    %124 = arith.mulf %122, %123 : vector<32x256xf32>
    %125 = vector.extract_strided_slice %1 {offsets = [0, 3], sizes = [32, 1], strides = [1, 1]} : vector<32x9xf32> to vector<32x1xf32>
    %126 = vector.broadcast %125 : vector<32x1xf32> to vector<32x256xf32>
    %127 = arith.mulf %121, %126 : vector<32x256xf32>
    %128 = vector.extract_strided_slice %1 {offsets = [0, 4], sizes = [32, 1], strides = [1, 1]} : vector<32x9xf32> to vector<32x1xf32>
    %129 = vector.broadcast %128 : vector<32x1xf32> to vector<32x256xf32>
    %130 = arith.mulf %118, %129 : vector<32x256xf32>
    %131 = arith.addf %127, %130 : vector<32x256xf32>
    %132 = vector.extract_strided_slice %1 {offsets = [0, 5], sizes = [32, 1], strides = [1, 1]} : vector<32x9xf32> to vector<32x1xf32>
    %133 = vector.broadcast %132 : vector<32x1xf32> to vector<32x256xf32>
    %134 = arith.mulf %124, %133 : vector<32x256xf32>
    %135 = arith.addf %131, %134 : vector<32x256xf32>
    %136 = vector.extract_strided_slice %1 {offsets = [0, 0], sizes = [32, 1], strides = [1, 1]} : vector<32x9xf32> to vector<32x1xf32>
    %137 = vector.broadcast %136 : vector<32x1xf32> to vector<32x256xf32>
    %138 = arith.mulf %121, %137 : vector<32x256xf32>
    %139 = vector.extract_strided_slice %1 {offsets = [0, 1], sizes = [32, 1], strides = [1, 1]} : vector<32x9xf32> to vector<32x1xf32>
    %140 = vector.broadcast %139 : vector<32x1xf32> to vector<32x256xf32>
    %141 = arith.mulf %118, %140 : vector<32x256xf32>
    %142 = arith.addf %138, %141 : vector<32x256xf32>
    %143 = vector.extract_strided_slice %1 {offsets = [0, 2], sizes = [32, 1], strides = [1, 1]} : vector<32x9xf32> to vector<32x1xf32>
    %144 = vector.broadcast %143 : vector<32x1xf32> to vector<32x256xf32>
    %145 = arith.mulf %124, %144 : vector<32x256xf32>
    %146 = arith.addf %142, %145 : vector<32x256xf32>
    %c16_i32_32 = arith.constant 16 : i32
    %147 = tpu.dynamic_rotate %146 by %c16_i32_32 dim 1 : vector<32x256xf32>, i32 -> vector<32x256xf32>
    %148 = vector.broadcast %12 : vector<1x256xf32> to vector<32x256xf32>
    %149 = arith.mulf %147, %148 : vector<32x256xf32>
    %150 = arith.addf %135, %149 : vector<32x256xf32>
    %151 = vector.extract_strided_slice %1 {offsets = [0, 6], sizes = [32, 1], strides = [1, 1]} : vector<32x9xf32> to vector<32x1xf32>
    %152 = vector.broadcast %151 : vector<32x1xf32> to vector<32x256xf32>
    %153 = arith.mulf %121, %152 : vector<32x256xf32>
    %154 = vector.extract_strided_slice %1 {offsets = [0, 7], sizes = [32, 1], strides = [1, 1]} : vector<32x9xf32> to vector<32x1xf32>
    %155 = vector.broadcast %154 : vector<32x1xf32> to vector<32x256xf32>
    %156 = arith.mulf %118, %155 : vector<32x256xf32>
    %157 = arith.addf %153, %156 : vector<32x256xf32>
    %158 = vector.extract_strided_slice %1 {offsets = [0, 8], sizes = [32, 1], strides = [1, 1]} : vector<32x9xf32> to vector<32x1xf32>
    %159 = vector.broadcast %158 : vector<32x1xf32> to vector<32x256xf32>
    %160 = arith.mulf %124, %159 : vector<32x256xf32>
    %161 = arith.addf %157, %160 : vector<32x256xf32>
    %c240_i32_33 = arith.constant 240 : i32
    %162 = tpu.dynamic_rotate %161 by %c240_i32_33 dim 1 : vector<32x256xf32>, i32 -> vector<32x256xf32>
    %163 = vector.broadcast %13 : vector<1x256xf32> to vector<32x256xf32>
    %164 = arith.mulf %162, %163 : vector<32x256xf32>
    %165 = arith.addf %150, %164 : vector<32x256xf32>
    %166 = vector.broadcast %5 : vector<32x1xf32> to vector<32x256xf32>
    %167 = arith.addf %165, %166 : vector<32x256xf32>
    %168 = arith.negf %167 : vector<32x256xf32>
    %169 = math.exp %168 : vector<32x256xf32>
    %cst_34 = arith.constant 1.000000e+00 : f32
    %170 = vector.broadcast %cst_34 : f32 to vector<32x256xf32>
    %171 = arith.addf %170, %169 : vector<32x256xf32>
    %172 = arith.divf %170, %171 : vector<32x256xf32>
    %173 = arith.mulf %167, %172 : vector<32x256xf32>
    %cst_35 = arith.constant dense<0.000000e+00> : vector<32xf32>
    %174 = vector.multi_reduction <add>, %173, %cst_35 [1] : vector<32x256xf32> to vector<32xf32>
    %175 = vector.shape_cast %174 : vector<32xf32> to vector<32x1xf32>
    %cst_36 = arith.constant 2.560000e+02 : f32
    %176 = vector.broadcast %cst_36 : f32 to vector<32x1xf32>
    %177 = arith.divf %175, %176 : vector<32x1xf32>
    %178 = vector.broadcast %177 : vector<32x1xf32> to vector<32x2xf32>
    %179 = arith.mulf %178, %6 : vector<32x2xf32>
    %cst_37 = arith.constant dense<0.000000e+00> : vector<2xf32>
    %180 = vector.multi_reduction <add>, %179, %cst_37 [0] : vector<32x2xf32> to vector<2xf32>
    %181 = vector.shape_cast %180 : vector<2xf32> to vector<1x2xf32>
    %cst_38 = arith.constant 0.000000e+00 : f32
    %182 = vector.broadcast %cst_38 : f32 to vector<1x2xf32>
    %183 = arith.maximumf %181, %182 : vector<1x2xf32>
    %184 = vector.broadcast %183 : vector<1x2xf32> to vector<32x2xf32>
    %185 = arith.mulf %7, %184 : vector<32x2xf32>
    %cst_39 = arith.constant dense<0.000000e+00> : vector<32xf32>
    %186 = vector.multi_reduction <add>, %185, %cst_39 [1] : vector<32x2xf32> to vector<32xf32>
    %187 = vector.shape_cast %186 : vector<32xf32> to vector<32x1xf32>
    %188 = arith.negf %187 : vector<32x1xf32>
    %189 = math.exp %188 : vector<32x1xf32>
    %cst_40 = arith.constant 1.000000e+00 : f32
    %190 = vector.broadcast %cst_40 : f32 to vector<32x1xf32>
    %191 = arith.addf %190, %189 : vector<32x1xf32>
    %192 = arith.divf %190, %191 : vector<32x1xf32>
    %193 = vector.broadcast %192 : vector<32x1xf32> to vector<32x256xf32>
    %194 = arith.mulf %173, %193 : vector<32x256xf32>
    %cst_41 = arith.constant dense<0.000000e+00> : vector<8x256xf32>
    %195 = tpu.matmul %2, %194, %cst_41 {dimension_numbers = #tpu.dot_dimension_numbers<[1], [0], [0], [1], [0, 0, 1, 1], [], []>} : vector<8x32xf32>, vector<32x256xf32>, vector<8x256xf32> -> vector<8x256xf32>
    %196 = vector.broadcast %8 : vector<8x1xf32> to vector<8x256xf32>
    %197 = arith.addf %195, %196 : vector<8x256xf32>
    %198 = arith.addf %197, %109 : vector<8x256xf32>
    %c1_42 = arith.constant 1 : index
    %c0_43 = arith.constant 0 : index
    %c0_44 = arith.constant 0 : index
    %199 = vector.load %arg8[%c1_42, %c0_43, %c0_44] : memref<2x8x256xf32, #tpu.memory_space<vmem>>, vector<1x8x256xf32>
    %200 = vector.shape_cast %199 : vector<1x8x256xf32> to vector<8x256xf32>
    %201 = vector.shape_cast %198 : vector<8x256xf32> to vector<1x8x256xf32>
    tpu.vector_store %arg8[%c1_42, %c0_43, %c0_44], %201 {strides = array<i32>} : memref<2x8x256xf32, #tpu.memory_space<vmem>>, vector<1x8x256xf32>,
    return
  }
  func.func @transform_0(%arg0: i32) -> (i32, i32, i32) {
    %c0_i32 = arith.constant 0 : i32
    %c0_i32_0 = arith.constant 0 : i32
    %c0_i32_1 = arith.constant 0 : i32
    %c0_i32_2 = arith.constant 0 : i32
    return %c0_i32, %c0_i32_0, %c0_i32_1 : i32, i32, i32
  }
  func.func @transform_1(%arg0: i32) -> (i32, i32) {
    %c0_i32 = arith.constant 0 : i32
    %c0_i32_0 = arith.constant 0 : i32
    %c0_i32_1 = arith.constant 0 : i32
    return %c0_i32, %c0_i32_0 : i32, i32
  }
  func.func @transform_2(%arg0: i32) -> (i32, i32) {
    %c0_i32 = arith.constant 0 : i32
    %c0_i32_0 = arith.constant 0 : i32
    %c0_i32_1 = arith.constant 0 : i32
    return %c0_i32, %c0_i32_0 : i32, i32
  }
  func.func @transform_3(%arg0: i32) -> (i32, i32) {
    %c0_i32 = arith.constant 0 : i32
    %c0_i32_0 = arith.constant 0 : i32
    %c0_i32_1 = arith.constant 0 : i32
    return %c0_i32, %c0_i32_0 : i32, i32
  }
  func.func @transform_4(%arg0: i32) -> (i32, i32) {
    %c0_i32 = arith.constant 0 : i32
    %c0_i32_0 = arith.constant 0 : i32
    %c0_i32_1 = arith.constant 0 : i32
    return %c0_i32, %c0_i32_0 : i32, i32
  }
  func.func @transform_5(%arg0: i32) -> (i32, i32) {
    %c0_i32 = arith.constant 0 : i32
    %c0_i32_0 = arith.constant 0 : i32
    %c0_i32_1 = arith.constant 0 : i32
    return %c0_i32, %c0_i32_0 : i32, i32
  }
  func.func @transform_6(%arg0: i32) -> (i32, i32) {
    %c0_i32 = arith.constant 0 : i32
    %c0_i32_0 = arith.constant 0 : i32
    %c0_i32_1 = arith.constant 0 : i32
    return %c0_i32, %c0_i32_0 : i32, i32
  }
  func.func @transform_7(%arg0: i32) -> (i32, i32, i32) {
    %c0_i32 = arith.constant 0 : i32
    %c0_i32_0 = arith.constant 0 : i32
    %c0_i32_1 = arith.constant 0 : i32
    %c0_i32_2 = arith.constant 0 : i32
    return %c0_i32, %c0_i32_0, %c0_i32_1 : i32, i32, i32
  }
}

</mosaic_0001>

<bundles_post_ra>
// kernel: tpu_custom_call.1
= control target key start
LH: loop header
LB: loop body
LE: loop exit
PB: predicated region body
PF: predicated region fallthrough
CT: control target
= control target key end

     0   :  { %vm64_vm0 = vcmask 64512   ;;  %v3145_v3 = vmov 0.0   ;;  %v3147_v4 = vmov 0   ;;  %s3137_s0 = inlined_call_operand.vmem [shape: f32[2,8,256], index: 0, kind: input, shape index: {}]   ;;  %s3138_s1 = inlined_call_operand.vmem [shape: f32[32,8], index: 1, kind: input, shape index: {}]   ;;  %s3139_s2 = inlined_call_operand.vmem [shape: f32[32,9], index: 2, kind: input, shape index: {}]   ;;  %s3140_s3 = inlined_call_operand.vmem [shape: f32[8,32], index: 3, kind: input, shape index: {}]   ;;  %s3141_s4 = inlined_call_operand.vmem [shape: f32[32,6], index: 4, kind: input, shape index: {}]   ;;  %s3142_s5 = inlined_call_operand.vmem [shape: f32[8,1], index: 5, kind: input, shape index: {}]   ;;  %s3143_s6 = inlined_call_operand.vmem [shape: f32[4,256], index: 6, kind: input, shape index: {}]   ;;  %s3144_s7 = inlined_call_operand.hbm [shape: f32[2,8,256], index: 7, kind: output, shape index: {}]  }
   0x1   :  { %v43_v0 = vld [vmem:[%s3137_s0 + $0x8] sm:$0xff]  ;;  %v42_v1 = vld [vmem:[%s3137_s0] sm:$0xff]  ;;  %141 = vmatprep.mubr.f32.mxu0 %v3145_v3  ;;  %1723 = vset.pattern.permute.xlu1 %v3147_v4  ;;  %v2021_v5 = vld [vmem:[%s3141_s4 + $0x10] sm:$0xff] }
   0x2   :  { %v27_v2 = vld [vmem:[%s3138_s1] sm:$0xff]  ;;  %107 = vmatprep.subr.mxu0 %v43_v0  ;;  %56 = vperm.xlu1 %1723, %v2021_v5   ;;  %v28_v7 = vld [vmem:[%s3138_s1 + $0x8] sm:$0xff]  ;;  %v2037_v8 = vld [vmem:[%s3141_s4 + $0x18] sm:$0xff] }
   0x3   :  { %108 = vmatpush1.msra.mxu0 %v42_v1  ;;  %v2028_v6 = vld [vmem:[%s3141_s4] sm:$0xff]  ;;  %1722 = vset.pattern.permute.xlu0 %v3147_v4 }
   0x4   :  { %1652 = vmatmul.mubr.msk.f32.vlgmr.msra.gmra.mxu0 %vm64_vm0, %v27_v2 }
   0x5   :  { %147 = vmatprep.mubr.f32.mxu0 %v3145_v3 }
   0x6   :  { %12 = vsyncpa [#allocation3], 0  ;;  %46 = vperm.xlu0 %1722, %v2028_v6   ;;  %971 = vmatprep.mubr.f32.mxu1 %v3145_v3  ;;  %v2045_v9 = vld [vmem:[%s3141_s4 + $0x8] sm:$0xff]  ;;  %v29_v10 = vld [vmem:[%s3138_s1 + $0x10] sm:$0xff]  ;;  %v1951_v14 = vmov 1   ;;  %v1952_v16 = vmov 2  }
   0x7   :  { %61 = vperm.xlu1 %1723, %v2037_v8   ;;  %v2056_v11 = vld [vmem:[%s3139_s2 + $0x8] sm:$0xff]  ;;  %v2062_v12 = vld [vmem:[%s3139_s2] sm:$0xff]  ;;  %v30_v13 = vld [vmem:[%s3138_s1 + $0x18] sm:$0xff]  ;;  %v1953_v18 = vmov 6   ;;  %v1954_v19 = vmov 7   ;;  %v1955_v20 = vmov 8  }
   0x8   :  { %1653 = vmatmul.mubr.msk.f32.gmra.mxu0 %vm64_vm0, %v28_v7  ;;  %v2079_v15 = vld [vmem:[%s3139_s2 + $0x10] sm:$0xff]  ;;  %v2088_v17 = vld [vmem:[%s3139_s2 + $0x18] sm:$0xff]  ;;  %v1956_v21 = vmov 3   ;;  %s1957_s2 = smov 1   ;;  %s1958_s29 = smov 127   ;;  %vm814_vm5 = vcmask 31760  }
   0x9   :  { %153 = vmatprep.mubr.f32.mxu0 %v3145_v3  ;;  %s1962_s9 = smov 112   ;;  %s1963_s18 = smov 2   ;;  %vm853_vm6 = vcmask 15360   ;;  %vm903_vm7 = vcmask 261120  }
   0xa   :  { %51 = vperm.xlu0 %1722, %v2045_v9   ;;  %s1964_s19 = smov 124   ;;  %s1965_s23 = smov [#allocation2]  }
   0xb   :  { %424 = vperm.xlu1 %1723, %v2056_v11   ;;  %s1641_s24 = sshll.u32 %s1965_s23, 4  ;;  %s1642_s24 = int_to_ptr.vmem [resolvable:$true] %s1641_s24 }
   0xc   :  { %1654 = vmatmul.mubr.msk.f32.gmra.mxu0 %vm64_vm0, %v29_v10  ;;  %p1932_p1 = scmp.lt.s32.totalorder %s1642_s24, %s1642_s24 }
   0xd   :  { %159 = vmatprep.mubr.f32.mxu0 %v3145_v3 }
   0xe   :  { %420 = vperm.xlu0 %1722, %v2062_v12  }
   0xf   :  { %1725 = vset.pattern.permute.xlu1 %v1951_v14 }
  0x10   :  { %1655 = vmatmul.mubr.msk.f32.gmra.mxu0 %vm64_vm0, %v30_v13  ;;  %448 = vperm.xlu1 %1725, %v2056_v11  }
  0x11   :  { %1624 = vmatprep.mubr.f32.mxu0 %v3145_v3 }
  0x12   :  { %1724 = vset.pattern.permute.xlu0 %v1951_v14 }
  0x13   :  { %444 = vperm.xlu0 %1724, %v2062_v12  }
  0x14   :  { %1726 = vset.pattern.permute.xlu1 %v3147_v4 }
  0x15   :  { %428 = vperm.xlu1 %1726, %v2079_v15  }
  0x17   :  { %452 = vperm.xlu0 %1724, %v2079_v15  }
  0x19   :  { %1727 = vset.pattern.permute.xlu1 %v1952_v16 }
  0x1a   :  { %476 = vperm.xlu1 %1727, %v2062_v12  }
  0x1b   :  { %456 = vperm.xlu0 %1724, %v2088_v17  }
  0x1e   :  { %1728 = vset.pattern.permute.xlu1 %v1953_v18 }
  0x1f   :  { %1731 = vset.pattern.permute.xlu0 %v1954_v19  ;;  %567 = vperm.xlu1 %1728, %v2062_v12  }
  0x20   :  { %591 = vperm.xlu0 %1731, %v2062_v12  }
  0x23   :  { %571 = vperm.xlu1 %1728, %v2056_v11  }
  0x24   :  { %599 = vperm.xlu0 %1731, %v2079_v15  }
  0x27   :  { %1729 = vset.pattern.permute.xlu1 %v1954_v19 }
  0x28   :  { %1734 = vset.pattern.permute.xlu0 %v1952_v16  ;;  %595 = vperm.xlu1 %1729, %v2056_v11  }
  0x29   :  { %480 = vperm.xlu0 %1734, %v2056_v11  }
  0x2c   :  { %1730 = vset.pattern.permute.xlu1 %v3147_v4 }
  0x2d   :  { %488 = vperm.xlu0 %1734, %v2088_v17   ;;  %432 = vperm.xlu1 %1730, %v2088_v17  }
  0x31   :  { %1738 = vset.pattern.permute.xlu0 %v1955_v20  ;;  %1732 = vset.pattern.permute.xlu1 %v1952_v16 }
  0x32   :  { %631 = vperm.xlu0 %1738, %v2079_v15   ;;  %484 = vperm.xlu1 %1732, %v2079_v15  }
  0x36   :  { %1733 = vset.pattern.permute.xlu1 %v1953_v18 }
  0x37   :  { %575 = vperm.xlu1 %1733, %v2079_v15  }
  0x3b   :  { %1735 = vset.pattern.permute.xlu1 %v1955_v20 }
  0x3c   :  { %623 = vperm.xlu1 %1735, %v2062_v12  }
  0x40   :  { %627 = vperm.xlu1 %1735, %v2056_v11  }
  0x44   :  { %1736 = vset.pattern.permute.xlu1 %v1953_v18 }
  0x45   :  { %579 = vperm.xlu1 %1736, %v2088_v17  }
  0x49   :  { %1737 = vset.pattern.permute.xlu1 %v1954_v19 }
  0x4a   :  { %603 = vperm.xlu1 %1737, %v2088_v17  }
  0x4e   :  { %1739 = vset.pattern.permute.xlu1 %v1956_v21 }
  0x7d   :  { %v2117_v35 = vpop.permute.xlu1 %56 }
  0x7e   :  { %3194 = vst [vmem:[#allocation5_spill] sm:$0xff] %v2117_v35 }
  0x81   :  { %v2109_v22 = vpop.permute.xlu0 %46 }
  0x82   :  { %v2121_v44 = vpop.permute.xlu1 %61 }
  0x83   :  { %3195 = vst [vmem:[#allocation6_spill] sm:$0xff] %v2121_v44 }
  0x85   :  { %v2113_v28 = vpop.permute.xlu0 %51 }
  0xc4   :  { %v143_v23 = vpop.f32.mrf.mxu0 }
  0xc5   :  { %v144_v24 = vadd.f32 %v143_v23, %v2109_v22 }
  0xc6   :  { %v145_v25 = vpop.f32.mrf.mxu0 }
  0xc7   :  { %v1656_v26 = vmul.f32 -1.442695, %v144_v24  ;;  %v146_v27 = vadd.f32 %v145_v25, %v2109_v22 }
  0xc8   :  { %v149_v29 = vpop.f32.mrf.mxu0 }
  0xc9   :  { %1750 = vpow2.f32 %v1656_v26  ;;  %v1657_v30 = vmul.f32 -1.442695, %v146_v27  ;;  %v150_v31 = vadd.f32 %v149_v29, %v2113_v28 }
  0xca   :  { %v151_v32 = vpop.f32.mrf.mxu0 }
  0xcb   :  { %1752 = vpow2.f32 %v1657_v30  ;;  %v1658_v33 = vmul.f32 -1.442695, %v150_v31  ;;  %v152_v34 = vadd.f32 %v151_v32, %v2113_v28 }
  0xcc   :  { %v155_v36 = vpop.f32.mrf.mxu0 }
  0xcd   :  { %1754 = vpow2.f32 %v1658_v33  ;;  %v1659_v37 = vmul.f32 -1.442695, %v152_v34  ;;  %v156_v38 = vadd.f32 %v155_v36, %v2117_v35  ;;  %v2170_v33 = vpop.permute.xlu1 %424 }
  0xce   :  { %v157_v39 = vpop.f32.mrf.mxu0  ;;  %3196 = vst [vmem:[#allocation7_spill] sm:$0xff] %v2170_v33 }
  0xcf   :  { %1756 = vpow2.f32 %v1659_v37  ;;  %v1660_v40 = vmul.f32 -1.442695, %v156_v38  ;;  %v158_v41 = vadd.f32 %v157_v39, %v2117_v35  ;;  %v1960_v37 = vmov 5  }
  0xd0   :  { %v161_v43 = vpop.f32.mrf.mxu0 }
  0xd1   :  { %1758 = vpow2.f32 %v1660_v40  ;;  %v1661_v42 = vmul.f32 -1.442695, %v158_v41  ;;  %v162_v46 = vadd.f32 %v161_v43, %v2121_v44 }
  0xd2   :  { %v163_v48 = vpop.f32.mrf.mxu0 }
  0xd3   :  { %1760 = vpow2.f32 %v1661_v42  ;;  %v1662_v51 = vmul.f32 -1.442695, %v162_v46  ;;  %v164_v52 = vadd.f32 %v163_v48, %v2121_v44 }
  0xd5   :  { %v1663_v56 = vmul.f32 -1.442695, %v164_v52 }
  0xd6   :  { %v1751_v45 = vpop.eup %1750 }
  0xd7   :  { %v190_v47 = vadd.f32 1.0, %v1751_v45 }
  0xd8   :  { %v1753_v49 = vpop.eup %1752 }
  0xd9   :  { %1762 = vrcp.f32 %v190_v47  ;;  %v191_v53 = vadd.f32 1.0, %v1753_v49 }
  0xda   :  { %v1755_v50 = vpop.eup %1754 }
  0xdb   :  { %v192_v54 = vadd.f32 1.0, %v1755_v50 }
  0xdc   :  { %v1757_v55 = vpop.eup %1756 }
  0xdd   :  { %1764 = vrcp.f32 %v192_v54  ;;  %v193_v57 = vadd.f32 1.0, %v1757_v55 }
  0xde   :  { %1766 = vpow2.f32 %v1662_v51  ;;  %v1759_v58 = vpop.eup %1758 }
  0xdf   :  { %1768 = vrcp.f32 %v191_v53  ;;  %v194_v59 = vadd.f32 1.0, %v1759_v58  ;;  %v2245_v53 = vld [vmem:[%s3143_s6] sm:$0xff]  ;;  %s1961_s6 = smov 16  }
  0xe0   :  { %1770 = vpow2.f32 %v1663_v56  ;;  %v1761_v60 = vpop.eup %1760 }
  0xe1   :  { %1772 = vrcp.f32 %v193_v57  ;;  %v195_v63 = vadd.f32 1.0, %v1761_v60 }
  0xe2   :  { %1774 = vrcp.f32 %v194_v59 }
  0xe3   :  { %1776 = vrcp.f32 %v195_v63 }
  0xe6   :  { %v1763_v61 = vpop.eup %1762 }
  0xe7   :  { %v2125_v62 = vmul.f32 %v1763_v61, %v144_v24 }
  0xe9   :  { %222 = vrot.lane.b32.xlu1 %v2125_v62, %s1957_s2 }
  0xea   :  { %v1765_v0 = vpop.eup %1764 }
  0xeb   :  { %v1767_v1 = vpop.eup %1766  ;;  %v2129_v2 = vmul.f32 %v1765_v0, %v150_v31  ;;  %v1959_v31 = vmov 4  }
  0xec   :  { %v1769_v7 = vpop.eup %1768  ;;  %v196_v16 = vadd.f32 1.0, %v1767_v1 }
  0xed   :  { %224 = vrot.lane.b32.xlu0 %v2129_v2, %s1957_s2  ;;  %276 = vrot.lane.b32.xlu1 %v2125_v62, %s1958_s29  ;;  %v1771_v10 = vpop.eup %1770  ;;  %v2135_v13 = vmul.f32 %v1769_v7, %v146_v27 }
  0xee   :  { %v1773_v18 = vpop.eup %1772  ;;  %1778 = vrcp.f32 %v196_v16  ;;  %v197_v20 = vadd.f32 1.0, %v1771_v10 }
  0xef   :  { %v2141_v19 = vmul.f32 %v1773_v18, %v152_v34  ;;  %v1775_v23 = vpop.eup %1774  ;;  %v2179_v34 = vpop.permute.xlu1 %448 }
  0xf0   :  { %v2147_v24 = vmul.f32 %v1775_v23, %v156_v38  ;;  %1780 = vrcp.f32 %v197_v20  ;;  %v1777_v25 = vpop.eup %1776  ;;  %3197 = vst [vmem:[#allocation8_spill] sm:$0xff] %v2179_v34 }
  0xf1   :  { %278 = vrot.lane.b32.xlu0 %v2129_v2, %s1958_s29  ;;  %230 = vrot.lane.b32.xlu1 %v2135_v13, %s1957_s2  ;;  %v2153_v26 = vmul.f32 %v1777_v25, %v158_v41 }
  0xf3   :  { %v2183_v36 = vpop.permute.xlu1 %428 }
  0xf5   :  { %232 = vrot.lane.b32.xlu0 %v2141_v19, %s1957_s2  ;;  %284 = vrot.lane.b32.xlu1 %v2135_v13, %s1958_s29 }
  0xf7   :  { %v2188_v38 = vpop.permute.xlu1 %476 }
  0xf8   :  { %3198 = vst [vmem:[#allocation9_spill] sm:$0xff] %v2188_v38 }
  0xf9   :  { %286 = vrot.lane.b32.xlu0 %v2141_v19, %s1958_s29  ;;  %226 = vrot.lane.b32.xlu1 %v2147_v24, %s1957_s2 }
  0xfb   :  { %v1779_v27 = vpop.eup %1778  ;;  %v2193_v39 = vpop.permute.xlu1 %567 }
  0xfc   :  { %v2162_v29 = vmul.f32 %v1779_v27, %v162_v46  ;;  %3199 = vst [vmem:[#allocation10_spill] sm:$0xff] %v2193_v39 }
  0xfd   :  { %280 = vrot.lane.b32.xlu0 %v2147_v24, %s1958_s29  ;;  %288 = vrot.lane.b32.xlu1 %v2153_v26, %s1958_s29  ;;  %v1781_v30 = vpop.eup %1780 }
  0xfe   :  { %v2168_v32 = vmul.f32 %v1781_v30, %v164_v52 }
 0x101   :  { %234 = vrot.lane.b32.xlu0 %v2153_v26, %s1957_s2  ;;  %329 = vperm.xlu1 %1739, %v2062_v12  }
 0x105   :  { %228 = vrot.lane.b32.xlu0 %v2162_v29, %s1957_s2  ;;  %282 = vrot.lane.b32.xlu1 %v2162_v29, %s1958_s29 }
 0x106   :  { %1741 = vset.pattern.permute.xlu1 %v1959_v31 }
 0x109   :  { %635 = vperm.xlu0 %1738, %v2088_v17   ;;  %236 = vrot.lane.b32.xlu1 %v2168_v32, %s1957_s2 }
 0x10d   :  { %1740 = vset.pattern.permute.xlu0 %v1956_v21  ;;  %290 = vrot.lane.b32.xlu1 %v2168_v32, %s1958_s29 }
 0x10e   :  { %334 = vperm.xlu0 %1740, %v2056_v11  }
 0x111   :  { %356 = vperm.xlu1 %1741, %v2062_v12  }
 0x112   :  { %339 = vperm.xlu0 %1740, %v2079_v15  }
 0x115   :  { %360 = vperm.xlu1 %1741, %v2056_v11  }
 0x116   :  { %1742 = vset.pattern.permute.xlu0 %v1960_v37 }
 0x117   :  { %388 = vperm.xlu0 %1742, %v2062_v12   ;;  %v2198_v12 = vpop.permute.xlu1 %571 }
 0x119   :  { %364 = vperm.xlu1 %1741, %v2079_v15  }
 0x11b   :  { %1745 = vset.pattern.permute.xlu0 %v1959_v31  ;;  %v2202_v40 = vpop.permute.xlu1 %595 }
 0x11c   :  { %368 = vperm.xlu0 %1745, %v2088_v17  }
 0x11d   :  { %1743 = vset.pattern.permute.xlu1 %v1960_v37 }
 0x11e   :  { %392 = vperm.xlu1 %1743, %v2056_v11   ;;  %v2204_v11 = vpop.permute.xlu0 %420 }
 0x11f   :  { %3200 = vst [vmem:[#allocation11_spill] sm:$0xff] %v2204_v11 }
 0x120   :  { %1747 = vset.pattern.permute.xlu0 %v1951_v14 }
 0x121   :  { %714 = vperm.xlu0 %1747, %v2028_v6   ;;  %v2208_v6 = vpop.permute.xlu1 %432 }
 0x122   :  { %1744 = vset.pattern.permute.xlu1 %v1956_v21  ;;  %3201 = vst [vmem:[#allocation12_spill] sm:$0xff] %v2208_v6  ;;  %v2210_v21 = vpop.permute.xlu0 %444 }
 0x123   :  { %344 = vperm.xlu1 %1744, %v2088_v17   ;;  %3202 = vst [vmem:[#allocation13_spill] sm:$0xff] %v2210_v21 }
 0x125   :  { %v2213_v41 = vpop.permute.xlu1 %484 }
 0x126   :  { %3203 = vst [vmem:[#allocation14_spill] sm:$0xff] %v2213_v41  ;;  %v2215_v42 = vpop.permute.xlu0 %452 }
 0x127   :  { %1746 = vset.pattern.permute.xlu1 %v1960_v37 }
 0x128   :  { %396 = vperm.xlu1 %1746, %v2079_v15  }
 0x129   :  { %v2217_v15 = vpop.permute.xlu1 %575 }
 0x12a   :  { %3204 = vst [vmem:[#allocation15_spill] sm:$0xff] %v2217_v15 }
 0x12c   :  { %400 = vperm.xlu1 %1746, %v2088_v17   ;;  %v2219_v17 = vpop.permute.xlu0 %456 }
 0x12d   :  { %v2221_v43 = vpop.permute.xlu1 %623 }
 0x130   :  { %1748 = vset.pattern.permute.xlu1 %v1951_v14  ;;  %v2223_v45 = vpop.permute.xlu0 %591 }
 0x131   :  { %718 = vperm.xlu1 %1748, %v2045_v9   ;;  %v2227_v9 = vpop.permute.xlu1 %627  ;;  %v607_v35 = vmul.f32 %v2223_v45, %v2135_v13 }
 0x132   :  { %3205 = vst [vmem:[#allocation16_spill] sm:$0xff] %v2227_v9 }
 0x134   :  { %v2225_v14 = vpop.permute.xlu0 %599 }
 0x135   :  { %722 = vperm.xlu1 %1748, %v2021_v5   ;;  %v2231_v47 = vpop.permute.xlu1 %579  ;;  %v238_v5 = vlaneseq }
 0x136   :  { %3207 = vst [vmem:[#allocation18_spill] sm:$0xff] %v2231_v47 }
 0x137   :  { %v2235_v49 = vshrl.u32 %v238_v5, 7  ;;  %v2248_v56 = vand.u32 127, %v238_v5 }
 0x138   :  { %v2229_v46 = vpop.permute.xlu0 %480 }
 0x139   :  { %3206 = vst [vmem:[#allocation17_spill] sm:$0xff] %v2229_v46  ;;  %v2237_v50 = vpop.permute.xlu1 %603  ;;  %v252_v52 = vsub.s32 0, %v2235_v49  ;;  %v256_v54 = vsub.s32 4, %v2235_v49  ;;  %v303_v58 = vsub.s32 1, %v2235_v49  ;;  %v307_v59 = vsub.s32 5, %v2235_v49 }
 0x13a   :  { %3209 = vst [vmem:[#allocation20_spill] sm:$0xff] %v2237_v50  ;;  %vm240_vm1 = vcmp.lt.s32.totalorder %v2248_v56, 1  ;;  %vm292_vm2 = vcmp.lt.s32.totalorder %v2248_v56, 127  ;;  %vm523_vm3 = vcmp.lt.s32.totalorder %v2248_v56, 16  ;;  %vm670_vm4 = vcmp.lt.s32.totalorder %v2248_v56, 112 }
 0x13b   :  { %v253_v57 = vrot.slane %v2245_v53, %v252_v52  ;;  %v257_v60 = vrot.slane %v2245_v53, %v256_v54  ;;  %v304_v1 = vrot.slane %v2245_v53, %v303_v58  ;;  %v308_v7 = vrot.slane %v2245_v53, %v307_v59 }
 0x13c   :  { %v2233_v48 = vpop.permute.xlu0 %488 }
 0x13d   :  { %3208 = vst [vmem:[#allocation19_spill] sm:$0xff] %v2233_v48  ;;  %v2255_v0 = vrot.slane %v253_v57, %v252_v52  ;;  %v2259_v10 = vrot.slane %v257_v60, %v252_v52  ;;  %v2269_v27 = vrot.slane %v304_v1, %v303_v58  ;;  %v2271_v30 = vrot.slane %v308_v7, %v303_v58 }
 0x13e   :  { %v459_v7 = vmul.f32 %v2210_v21, %v2125_v62 }
 0x140   :  { %v2239_v51 = vpop.permute.xlu0 %631 }
 0x141   :  { %3210 = vst [vmem:[#allocation21_spill] sm:$0xff] %v2239_v51 }
 0x15b   :  { %v223_v55 = vpop.permute.xlu1 %222 }
 0x15f   :  { %v225_v61 = vpop.permute.xlu0 %224  ;;  %v277_v63 = vpop.permute.xlu1 %276 }
 0x163   :  { %v279_v16 = vpop.permute.xlu0 %278  ;;  %v231_v18 = vpop.permute.xlu1 %230 }
 0x164   :  { %v241_v20 = vsel %vm240_vm1, %v223_v55, %v231_v18  ;;  %v245_v23 = vsel %vm240_vm1, %v231_v18, %v223_v55 }
 0x165   :  { %v2266_v25 = vmul.f32 %v2255_v0, %v245_v23  ;;  %v2274_v31 = vmul.f32 %v2259_v10, %v241_v20 }
 0x167   :  { %v233_v37 = vpop.permute.xlu0 %232  ;;  %v285_v5 = vpop.permute.xlu1 %284  ;;  %v435_v52 = vmul.f32 %v2204_v11, %v2266_v25 }
 0x168   :  { %v242_v54 = vsel %vm240_vm1, %v225_v61, %v233_v37  ;;  %v246_v55 = vsel %vm240_vm1, %v233_v37, %v225_v61  ;;  %v293_v57 = vsel %vm292_vm2, %v277_v63, %v285_v5  ;;  %v297_v58 = vsel %vm292_vm2, %v285_v5, %v277_v63 }
 0x169   :  { %v2287_v59 = vmul.f32 %v2255_v0, %v246_v55  ;;  %v2290_v60 = vmul.f32 %v2269_v27, %v293_v57  ;;  %v2293_v1 = vmul.f32 %v2271_v30, %v297_v58  ;;  %v436_v61 = vmul.f32 %v2204_v11, %v2274_v31 }
 0x16a   :  { %v2300_v18 = vmul.f32 %v2259_v10, %v242_v54  ;;  %v467_v63 = vadd.f32 %v459_v7, %v435_v52  ;;  %v461_v58 = vmul.f32 %v2179_v34, %v2129_v2  ;;  %v460_v54 = vmul.f32 %v2210_v21, %v2135_v13 }
 0x16b   :  { %v287_v20 = vpop.permute.xlu0 %286  ;;  %v491_v23 = vmul.f32 %v2188_v38, %v2290_v60  ;;  %v437_v37 = vmul.f32 %v2170_v33, %v2287_v59  ;;  %v227_v57 = vpop.permute.xlu1 %226  ;;  %v492_v4 = vmul.f32 %v2188_v38, %v2293_v1 }
 0x16c   :  { %v294_v5 = vsel %vm292_vm2, %v279_v16, %v287_v20  ;;  %v298_v55 = vsel %vm292_vm2, %v287_v20, %v279_v16  ;;  %v468_v44 = vadd.f32 %v460_v54, %v436_v61  ;;  %v638_v61 = vmul.f32 %v2221_v43, %v2290_v60 }
 0x16d   :  { %v2315_v52 = vmul.f32 %v2269_v27, %v294_v5  ;;  %v2318_v7 = vmul.f32 %v2271_v30, %v298_v55  ;;  %v499_v3 = vadd.f32 %v491_v23, %v467_v63  ;;  %v469_v16 = vadd.f32 %v461_v58, %v437_v37 }
 0x16e   :  { %v438_v5 = vmul.f32 %v2170_v33, %v2300_v18  ;;  %v582_v55 = vmul.f32 %v2193_v39, %v2266_v25  ;;  %v500_v63 = vadd.f32 %v492_v4, %v468_v44  ;;  %v462_v23 = vmul.f32 %v2179_v34, %v2141_v19 }
 0x16f   :  { %v281_v11 = vpop.permute.xlu0 %280  ;;  %507 = vrot.lane.b32.xlu0 %v499_v3, %s1961_s6  ;;  %v493_v20 = vmul.f32 %v2229_v46, %v2315_v52  ;;  %v494_v38 = vmul.f32 %v2229_v46, %v2318_v7  ;;  %v289_v3 = vpop.permute.xlu1 %288  ;;  %v606_v37 = vmul.f32 %v2223_v45, %v2125_v62  ;;  %v608_v58 = vmul.f32 %v2202_v40, %v2129_v2 }
 0x170   :  { %v470_v4 = vadd.f32 %v462_v23, %v438_v5  ;;  %v584_v44 = vmul.f32 %v2198_v12, %v2287_v59  ;;  %v640_v34 = vmul.f32 %v2227_v9, %v2315_v52 }
 0x171   :  { %v501_v21 = vadd.f32 %v493_v20, %v469_v16  ;;  %v583_v16 = vmul.f32 %v2193_v39, %v2274_v31  ;;  %v614_v33 = vadd.f32 %v606_v37, %v582_v55 }
 0x172   :  { %v502_v23 = vadd.f32 %v494_v38, %v470_v4  ;;  %v616_v37 = vadd.f32 %v608_v58, %v584_v44  ;;  %v609_v44 = vmul.f32 %v2202_v40, %v2141_v19 }
 0x173   :  { %v235_v54 = vpop.permute.xlu0 %234  ;;  %509 = vrot.lane.b32.xlu1 %v501_v21, %s1961_s6  ;;  %515 = vrot.lane.b32.xlu0 %v500_v63, %s1961_s6  ;;  %v295_v21 = vsel %vm292_vm2, %v281_v11, %v289_v3  ;;  %v646_v39 = vadd.f32 %v638_v61, %v614_v33  ;;  %v615_v38 = vadd.f32 %v607_v35, %v583_v16 }
 0x174   :  { %v243_v20 = vsel %vm240_vm1, %v227_v57, %v235_v54  ;;  %v247_v46 = vsel %vm240_vm1, %v235_v54, %v227_v57  ;;  %v639_v57 = vmul.f32 %v2221_v43, %v2293_v1  ;;  %v299_v54 = vsel %vm292_vm2, %v289_v3, %v281_v11 }
 0x175   :  { %v2354_v5 = vmul.f32 %v2255_v0, %v247_v46  ;;  %v2357_v63 = vmul.f32 %v2259_v10, %v243_v20  ;;  %v585_v46 = vmul.f32 %v2198_v12, %v2300_v18  ;;  %v2371_v33 = vmul.f32 %v2269_v27, %v295_v21 }
 0x176   :  { %v463_v61 = vmul.f32 %v2215_v42, %v2147_v24  ;;  %v648_v58 = vadd.f32 %v640_v34, %v616_v37  ;;  %v641_v11 = vmul.f32 %v2227_v9, %v2318_v7  ;;  %v647_v20 = vadd.f32 %v639_v57, %v615_v38 }
 0x177   :  { %v439_v55 = vmul.f32 %v2183_v36, %v2354_v5  ;;  %517 = vrot.lane.b32.xlu1 %v502_v23, %s1961_s6  ;;  %654 = vrot.lane.b32.xlu0 %v646_v39, %s1962_s9  ;;  %v440_v4 = vmul.f32 %v2183_v36, %v2357_v63  ;;  %v587_v3 = vmul.f32 %v2217_v15, %v2357_v63 }
 0x178   :  { %v2385_v35 = vmul.f32 %v2271_v30, %v299_v54  ;;  %v617_v39 = vadd.f32 %v609_v44, %v585_v46  ;;  %v464_v34 = vmul.f32 %v2215_v42, %v2153_v26  ;;  %v495_v23 = vmul.f32 %v2213_v41, %v2371_v33  ;;  %v229_v44 = vpop.permute.xlu0 %228 }
 0x179   :  { %v471_v21 = vadd.f32 %v463_v61, %v439_v55  ;;  %v611_v57 = vmul.f32 %v2225_v14, %v2153_v26  ;;  %v586_v55 = vmul.f32 %v2217_v15, %v2354_v5 }
 0x17a   :  { %v649_v37 = vadd.f32 %v641_v11, %v617_v39  ;;  %v472_v54 = vadd.f32 %v464_v34, %v440_v4  ;;  %v496_v61 = vmul.f32 %v2213_v41, %v2385_v35  ;;  %v643_v9 = vmul.f32 %v2239_v51, %v2385_v35 }
 0x17b   :  { %656 = vrot.lane.b32.xlu1 %v648_v58, %s1962_s9  ;;  %662 = vrot.lane.b32.xlu0 %v647_v20, %s1962_s9  ;;  %v503_v38 = vadd.f32 %v495_v23, %v471_v21  ;;  %v619_v46 = vadd.f32 %v611_v57, %v587_v3  ;;  %v610_v58 = vmul.f32 %v2225_v14, %v2147_v24 }
 0x17c   :  { %v2391_v16 = vpop.permute.xlu1 %329  ;;  %v504_v15 = vadd.f32 %v496_v61, %v472_v54  ;;  %v642_v3 = vmul.f32 %v2239_v51, %v2371_v33 }
 0x17d   :  { %v618_v11 = vadd.f32 %v610_v58, %v586_v55  ;;  %v651_v4 = vadd.f32 %v643_v9, %v619_v46 }
 0x17f   :  { %664 = vrot.lane.b32.xlu1 %v649_v37, %s1962_s9  ;;  %511 = vrot.lane.b32.xlu0 %v503_v38, %s1961_s6  ;;  %v650_v57 = vadd.f32 %v642_v3, %v618_v11  ;;  %v465_v11 = vmul.f32 %v2219_v17, %v2162_v29 }
 0x180   :  { %v283_v20 = vpop.permute.xlu1 %282 }
 0x183   :  { %519 = vrot.lane.b32.xlu1 %v504_v15, %s1961_s6  ;;  %666 = vrot.lane.b32.xlu0 %v651_v4, %s1962_s9  ;;  %v466_v4 = vmul.f32 %v2219_v17, %v2168_v32 }
 0x184   :  { %v2411_v21 = vpop.permute.xlu0 %635  ;;  %v237_v39 = vpop.permute.xlu1 %236 }
 0x185   :  { %3211 = vst [vmem:[#allocation22_spill] sm:$0xff] %v2411_v21  ;;  %v244_v34 = vsel %vm240_vm1, %v229_v44, %v237_v39  ;;  %v248_v23 = vsel %vm240_vm1, %v237_v39, %v229_v44 }
 0x186   :  { %v2418_v55 = vmul.f32 %v2255_v0, %v248_v23  ;;  %v2421_v15 = vmul.f32 %v2259_v10, %v244_v34 }
 0x187   :  { %658 = vrot.lane.b32.xlu1 %v650_v57, %s1962_s9 }
 0x188   :  { %v441_v9 = vmul.f32 %v2208_v6, %v2418_v55  ;;  %v442_v37 = vmul.f32 %v2208_v6, %v2421_v15  ;;  %v291_v54 = vpop.permute.xlu1 %290  ;;  %v588_v3 = vmul.f32 %v2231_v47, %v2418_v55  ;;  %v612_v6 = vmul.f32 %v2237_v50, %v2162_v29 }
 0x189   :  { %v296_v38 = vsel %vm292_vm2, %v283_v20, %v291_v54  ;;  %v300_v46 = vsel %vm292_vm2, %v291_v54, %v283_v20  ;;  %v2432_v61 = vpop.permute.xlu0 %334  ;;  %v589_v20 = vmul.f32 %v2231_v47, %v2421_v15 }
 0x18a   :  { %v2435_v58 = vmul.f32 %v2269_v27, %v296_v38  ;;  %v2438_v44 = vmul.f32 %v2271_v30, %v300_v46  ;;  %v473_v34 = vadd.f32 %v465_v11, %v441_v9  ;;  %v474_v57 = vadd.f32 %v466_v4, %v442_v37 }
 0x18b   :  { %v613_v46 = vmul.f32 %v2237_v50, %v2168_v32 }
 0x18c   :  { %v2448_v39 = vpop.permute.xlu1 %356  ;;  %v497_v23 = vmul.f32 %v2233_v48, %v2435_v58  ;;  %v498_v54 = vmul.f32 %v2233_v48, %v2438_v44  ;;  %v645_v9 = vmul.f32 %v2411_v21, %v2438_v44  ;;  %v644_v11 = vmul.f32 %v2411_v21, %v2435_v58 }
 0x18d   :  { %v2454_v38 = vpop.permute.xlu0 %339  ;;  %v371_v37 = vmul.f32 %v2448_v39, %v2125_v62  ;;  %v372_v4 = vmul.f32 %v2448_v39, %v2135_v13 }
 0x18e   :  { %v505_v51 = vadd.f32 %v497_v23, %v473_v34  ;;  %v506_v47 = vadd.f32 %v498_v54, %v474_v57  ;;  %v621_v34 = vadd.f32 %v613_v46, %v589_v20  ;;  %v620_v23 = vadd.f32 %v612_v6, %v588_v3 }
 0x18f   :  { %v347_v57 = vmul.f32 %v2391_v16, %v2266_v25  ;;  %v348_v54 = vmul.f32 %v2391_v16, %v2274_v31 }
 0x190   :  { %513 = vrot.lane.b32.xlu1 %v505_v51, %s1961_s6  ;;  %v2469_v48 = vpop.permute.xlu1 %360  ;;  %521 = vrot.lane.b32.xlu0 %v506_v47, %s1961_s6  ;;  %v653_v62 = vadd.f32 %v645_v9, %v621_v34  ;;  %v652_v50 = vadd.f32 %v644_v11, %v620_v23 }
 0x191   :  { %v379_v41 = vadd.f32 %v371_v37, %v347_v57  ;;  %v380_v13 = vadd.f32 %v372_v4, %v348_v54  ;;  %v373_v3 = vmul.f32 %v2469_v48, %v2129_v2  ;;  %v374_v20 = vmul.f32 %v2469_v48, %v2141_v19 }
 0x192   :  { %v2476_v21 = vpop.permute.xlu0 %388 }
 0x193   :  { %v403_v51 = vmul.f32 %v2476_v21, %v2290_v60  ;;  %v404_v47 = vmul.f32 %v2476_v21, %v2293_v1  ;;  %v349_v60 = vmul.f32 %v2432_v61, %v2287_v59  ;;  %v350_v1 = vmul.f32 %v2432_v61, %v2300_v18 }
 0x194   :  { %668 = vrot.lane.b32.xlu1 %v653_v62, %s1962_s9  ;;  %v2483_v6 = vpop.permute.xlu1 %364  ;;  %660 = vrot.lane.b32.xlu0 %v652_v50, %s1962_s9  ;;  %v3212_v59 = vmov 0  }
 0x195   :  { %v2486_v25 = vadd.f32 %v403_v51, %v379_v41  ;;  %v2488_v31 = vadd.f32 %v404_v47, %v380_v13  ;;  %v381_v41 = vadd.f32 %v373_v3, %v349_v60  ;;  %v382_v50 = vadd.f32 %v374_v20, %v350_v1 }
 0x196   :  { %v376_v18 = vmul.f32 %v2483_v6, %v2153_v26  ;;  %v534_v1 = vsub.s32 2, %v2235_v49 }
 0x197   :  { %v2520_v23 = vpop.permute.xlu0 %368 }
 0x198   :  { %726 = vperm.xlu0 %1747, %v2037_v8   ;;  %v375_v8 = vmul.f32 %v2483_v6, %v2147_v24  ;;  %v378_v62 = vmul.f32 %v2520_v23, %v2168_v32 }
 0x199   :  { %v2499_v46 = vpop.permute.xlu1 %392 }
 0x19a   :  { %v405_v9 = vmul.f32 %v2499_v46, %v2315_v52  ;;  %v406_v2 = vmul.f32 %v2499_v46, %v2318_v7  ;;  %v351_v52 = vmul.f32 %v2454_v38, %v2354_v5  ;;  %v352_v7 = vmul.f32 %v2454_v38, %v2357_v63 }
 0x19b   :  { %v377_v63 = vmul.f32 %v2520_v23, %v2162_v29 }
 0x19c   :  { %v2505_v11 = vadd.f32 %v405_v9, %v381_v41  ;;  %v2507_v19 = vadd.f32 %v406_v2, %v382_v50  ;;  %1749 = vset.pattern.permute.xlu0 %v3212_v59  ;;  %v383_v4 = vadd.f32 %v375_v8, %v351_v52  ;;  %v384_v34 = vadd.f32 %v376_v18, %v352_v7  ;;  %v2552_v32 = vpop.permute.xlu0 %714 }
 0x19d   :  { %3214 = vst [vmem:[#allocation24_spill] sm:$0xff] %v2552_v32  ;;  %v538_v41 = vsub.s32 6, %v2235_v49  ;;  %v685_v9 = vsub.s32 7, %v2235_v49 }
 0x19e   :  { %v2510_v37 = vpop.permute.xlu1 %344 }
 0x19f   :  { %v353_v54 = vmul.f32 %v2510_v37, %v2418_v55  ;;  %v354_v24 = vmul.f32 %v2510_v37, %v2421_v15  ;;  %v539_v2 = vrot.slane %v2245_v53, %v538_v41  ;;  %v686_v52 = vrot.slane %v2245_v53, %v685_v9 }
 0x1a1   :  { %v385_v47 = vadd.f32 %v377_v63, %v353_v54  ;;  %v386_v15 = vadd.f32 %v378_v62, %v354_v24 }
 0x1a3   :  { %v2522_v57 = vpop.permute.xlu1 %396 }
 0x1a4   :  { %v407_v26 = vmul.f32 %v2522_v57, %v2371_v33  ;;  %v408_v5 = vmul.f32 %v2522_v57, %v2385_v35 }
 0x1a6   :  { %v2536_v13 = vadd.f32 %v407_v26, %v383_v4  ;;  %v2538_v51 = vadd.f32 %v408_v5, %v384_v34  ;;  %v2567_v4 = vrot.slane %v539_v2, %v534_v1 }
 0x1a7   :  { %v2540_v55 = vpop.permute.xlu1 %400 }
 0x1a8   :  { %v409_v33 = vmul.f32 %v2540_v55, %v2435_v58  ;;  %v410_v35 = vmul.f32 %v2540_v55, %v2438_v44  ;;  %v681_v58 = vsub.s32 3, %v2235_v49  ;;  %v535_v44 = vrot.slane %v2245_v53, %v534_v1 }
 0x1aa   :  { %v2546_v3 = vadd.f32 %v409_v33, %v385_v47  ;;  %v2548_v29 = vadd.f32 %v410_v35, %v386_v15  ;;  %v682_v18 = vrot.slane %v2245_v53, %v681_v58  ;;  %v2565_v7 = vrot.slane %v535_v44, %v534_v1 }
 0x1ab   :  { %v2576_v5 = vrot.slane %v686_v52, %v681_v58 }
 0x1ac   :  { %v2550_v20 = vpop.permute.xlu1 %718  ;;  %v2574_v26 = vrot.slane %v682_v18, %v681_v58 }
 0x1ad   :  { %3213 = vst [vmem:[#allocation23_spill] sm:$0xff] %v2550_v20  ;;  %3216 = vst [vmem:[#allocation26_spill] sm:$0xff] %v2576_v5 }
 0x1b0   :  { %v2554_v60 = vpop.permute.xlu1 %722 }
 0x1b1   :  { %3215 = vst [vmem:[#allocation25_spill] sm:$0xff] %v2554_v60 }
 0x1e1   :  { %v508_v50 = vpop.permute.xlu0 %507 }
 0x1e5   :  { %v510_v59 = vpop.permute.xlu1 %509  ;;  %v516_v8 = vpop.permute.xlu0 %515 }
 0x1e6   :  { %v524_v34 = vsel %vm523_vm3, %v508_v50, %v516_v8  ;;  %v528_v49 = vsel %vm523_vm3, %v516_v8, %v508_v50 }
 0x1e7   :  { %v550_v53 = vmul.f32 %v2565_v7, %v528_v49  ;;  %v551_v63 = vmul.f32 %v2567_v4, %v524_v34 }
 0x1e9   :  { %v518_v54 = vpop.permute.xlu1 %517  ;;  %v655_v24 = vpop.permute.xlu0 %654  ;;  %v558_v58 = vadd.f32 %v550_v53, %v2486_v25  ;;  %v559_v9 = vadd.f32 %v551_v63, %v2488_v31 }
 0x1ea   :  { %v525_v62 = vsel %vm523_vm3, %v510_v59, %v518_v54  ;;  %v529_v47 = vsel %vm523_vm3, %v518_v54, %v510_v59 }
 0x1eb   :  { %v552_v35 = vmul.f32 %v2565_v7, %v529_v47  ;;  %v553_v1 = vmul.f32 %v2567_v4, %v525_v62 }
 0x1ed   :  { %v657_v15 = vpop.permute.xlu1 %656  ;;  %v663_v33 = vpop.permute.xlu0 %662  ;;  %v560_v49 = vadd.f32 %v552_v35, %v2505_v11  ;;  %v561_v54 = vadd.f32 %v553_v1, %v2507_v19 }
 0x1ee   :  { %v671_v41 = vsel %vm670_vm4, %v655_v24, %v663_v33  ;;  %v675_v50 = vsel %vm670_vm4, %v663_v33, %v655_v24 }
 0x1ef   :  { %v697_v44 = vmul.f32 %v2574_v26, %v671_v41  ;;  %v698_v2 = vmul.f32 %v2576_v5, %v675_v50 }
 0x1f1   :  { %v665_v59 = vpop.permute.xlu1 %664  ;;  %v705_v8 = vadd.f32 %v697_v44, %v558_v58  ;;  %v706_v18 = vadd.f32 %v698_v2, %v559_v9  ;;  %v512_v24 = vpop.permute.xlu0 %511 }
 0x1f2   :  { %v672_v52 = vsel %vm670_vm4, %v657_v15, %v665_v59  ;;  %v676_v34 = vsel %vm670_vm4, %v665_v59, %v657_v15 }
 0x1f3   :  { %v699_v25 = vmul.f32 %v2574_v26, %v672_v52  ;;  %v700_v31 = vmul.f32 %v2576_v5, %v676_v34  ;;  %v2603_v53 = vadd.f32 %v2552_v32, %v705_v8  ;;  %v2606_v63 = vadd.f32 %v2552_v32, %v706_v18 }
 0x1f5   :  { %v707_v62 = vadd.f32 %v699_v25, %v560_v49  ;;  %v708_v47 = vadd.f32 %v700_v31, %v561_v54  ;;  %v520_v33 = vpop.permute.xlu1 %519  ;;  %v1664_v19 = vmul.f32 -1.442695, %v2603_v53  ;;  %v1665_v35 = vmul.f32 -1.442695, %v2606_v63  ;;  %v667_v9 = vpop.permute.xlu0 %666 }
 0x1f6   :  { %v526_v15 = vsel %vm523_vm3, %v512_v24, %v520_v33  ;;  %v530_v11 = vsel %vm523_vm3, %v520_v33, %v512_v24 }
 0x1f7   :  { %v554_v1 = vmul.f32 %v2565_v7, %v530_v11  ;;  %v555_v41 = vmul.f32 %v2567_v4, %v526_v15  ;;  %v2617_v50 = vadd.f32 %v2550_v20, %v707_v62  ;;  %v2620_v58 = vadd.f32 %v2550_v20, %v708_v47 }
 0x1f8   :  { %1782 = vpow2.f32 %v1664_v19 }
 0x1f9   :  { %v659_v44 = vpop.permute.xlu1 %658  ;;  %1784 = vpow2.f32 %v1665_v35  ;;  %v1666_v2 = vmul.f32 -1.442695, %v2617_v50  ;;  %v562_v59 = vadd.f32 %v554_v1, %v2536_v13  ;;  %v1667_v52 = vmul.f32 -1.442695, %v2620_v58 }
 0x1fa   :  { %v673_v8 = vsel %vm670_vm4, %v659_v44, %v667_v9  ;;  %v677_v18 = vsel %vm670_vm4, %v667_v9, %v659_v44  ;;  %v563_v34 = vadd.f32 %v555_v41, %v2538_v51 }
 0x1fb   :  { %v701_v49 = vmul.f32 %v2574_v26, %v673_v8  ;;  %v702_v54 = vmul.f32 %v2576_v5, %v677_v18  ;;  %1786 = vpow2.f32 %v1666_v2 }
 0x1fc   :  { %1788 = vpow2.f32 %v1667_v52 }
 0x1fd   :  { %v709_v25 = vadd.f32 %v701_v49, %v562_v59  ;;  %v710_v31 = vadd.f32 %v702_v54, %v563_v34 }
 0x1ff   :  { %v733_v13 = vadd.f32 %v2554_v60, %v709_v25  ;;  %v734_v24 = vadd.f32 %v2554_v60, %v710_v31 }
 0x201   :  { %v1668_v62 = vmul.f32 -1.442695, %v733_v13  ;;  %v1669_v47 = vmul.f32 -1.442695, %v734_v24 }
 0x202   :  { %v514_v33 = vpop.permute.xlu1 %513  ;;  %v522_v15 = vpop.permute.xlu0 %521 }
 0x203   :  { %1790 = vpow2.f32 %v1668_v62  ;;  %v527_v2 = vsel %vm523_vm3, %v514_v33, %v522_v15  ;;  %v531_v59 = vsel %vm523_vm3, %v522_v15, %v514_v33 }
 0x204   :  { %1792 = vpow2.f32 %v1669_v47  ;;  %v556_v49 = vmul.f32 %v2565_v7, %v531_v59  ;;  %v557_v54 = vmul.f32 %v2567_v4, %v527_v2 }
 0x205   :  { %v1783_v11 = vpop.eup %1782 }
 0x206   :  { %v1785_v51 = vpop.eup %1784  ;;  %v761_v19 = vadd.f32 1.0, %v1783_v11  ;;  %v669_v41 = vpop.permute.xlu1 %668  ;;  %v564_v47 = vadd.f32 %v556_v49, %v2546_v3  ;;  %v565_v33 = vadd.f32 %v557_v54, %v2548_v29 }
 0x207   :  { %v762_v35 = vadd.f32 1.0, %v1785_v51  ;;  %v661_v9 = vpop.permute.xlu0 %660 }
 0x208   :  { %v1787_v1 = vpop.eup %1786  ;;  %1794 = vrcp.f32 %v761_v19  ;;  %v674_v52 = vsel %vm670_vm4, %v661_v9, %v669_v41  ;;  %v678_v34 = vsel %vm670_vm4, %v669_v41, %v661_v9 }
 0x209   :  { %v1789_v44 = vpop.eup %1788  ;;  %1796 = vrcp.f32 %v762_v35  ;;  %v763_v8 = vadd.f32 1.0, %v1787_v1  ;;  %v703_v25 = vmul.f32 %v2574_v26, %v674_v52  ;;  %v704_v31 = vmul.f32 %v2576_v5, %v678_v34 }
 0x20a   :  { %v764_v18 = vadd.f32 1.0, %v1789_v44 }
 0x20b   :  { %1798 = vrcp.f32 %v763_v8  ;;  %v711_v51 = vadd.f32 %v703_v25, %v564_v47  ;;  %v712_v19 = vadd.f32 %v704_v31, %v565_v33 }
 0x20c   :  { %1800 = vrcp.f32 %v764_v18 }
 0x210   :  { %v1791_v62 = vpop.eup %1790 }
 0x211   :  { %v1793_v15 = vpop.eup %1792  ;;  %v765_v11 = vadd.f32 1.0, %v1791_v62 }
 0x212   :  { %v766_v35 = vadd.f32 1.0, %v1793_v15 }
 0x213   :  { %v2648_v1 = vpop.permute.xlu0 %726  ;;  %1802 = vrcp.f32 %v765_v11 }
 0x214   :  { %3217 = vst [vmem:[#allocation27_spill] sm:$0xff] %v2648_v1  ;;  %1804 = vrcp.f32 %v766_v35  ;;  %v735_v41 = vadd.f32 %v2648_v1, %v711_v51  ;;  %v736_v9 = vadd.f32 %v2648_v1, %v712_v19 }
 0x215   :  { %v1795_v44 = vpop.eup %1794 }
 0x216   :  { %v1797_v2 = vpop.eup %1796  ;;  %v2653_v59 = vmul.f32 %v1795_v44, %v2603_v53  ;;  %v1670_v3 = vmul.f32 -1.442695, %v735_v41  ;;  %v1671_v29 = vmul.f32 -1.442695, %v736_v9 }
 0x217   :  { %v2656_v8 = vmul.f32 %v1797_v2, %v2606_v63 }
 0x218   :  { %v1799_v18 = vpop.eup %1798  ;;  %1806 = vpow2.f32 %v1670_v3 }
 0x219   :  { %v1801_v52 = vpop.eup %1800  ;;  %v793_v34 = vadd.f32 %v2656_v8, %v2653_v59  ;;  %v2661_v49 = vmul.f32 %v1799_v18, %v2617_v50  ;;  %1808 = vpow2.f32 %v1671_v29 }
 0x21a   :  { %v2664_v54 = vmul.f32 %v1801_v52, %v2620_v58  ;;  %v1910_v52 = vld [vmem:[%s3141_s4 + $0x8] sm:$0xff] }
 0x21b   :  { %794 = vadd.xlane.f32.xlu1 %v793_v34 }
 0x21c   :  { %v796_v53 = vadd.f32 %v2664_v54, %v2661_v49 }
 0x21e   :  { %797 = vadd.xlane.f32.xlu0 %v796_v53  ;;  %v1912_v53 = vld [vmem:[%s3141_s4 + $0x10] sm:$0xff] }
 0x220   :  { %v1803_v63 = vpop.eup %1802 }
 0x221   :  { %v1805_v25 = vpop.eup %1804  ;;  %v2668_v31 = vmul.f32 %v1803_v63, %v733_v13 }
 0x222   :  { %v2670_v62 = vmul.f32 %v1805_v25, %v734_v24 }
 0x224   :  { %v799_v47 = vadd.f32 %v2670_v62, %v2668_v31 }
 0x225   :  { %v1807_v50 = vpop.eup %1806 }
 0x226   :  { %v1809_v33 = vpop.eup %1808  ;;  %800 = vadd.xlane.f32.xlu0 %v799_v47  ;;  %v767_v15 = vadd.f32 1.0, %v1807_v50 }
 0x227   :  { %v768_v58 = vadd.f32 1.0, %v1809_v33 }
 0x228   :  { %1810 = vrcp.f32 %v767_v15 }
 0x229   :  { %1812 = vrcp.f32 %v768_v58 }
 0x235   :  { %v1811_v11 = vpop.eup %1810 }
 0x236   :  { %v1813_v51 = vpop.eup %1812  ;;  %v2674_v19 = vmul.f32 %v1811_v11, %v735_v41  ;;  %v1911_v41 = vld [vmem:[%s3141_s4] sm:$0xff]  ;;  %v1913_v11 = vld [vmem:[%s3141_s4 + $0x18] sm:$0xff] }
 0x237   :  { %v2676_v35 = vmul.f32 %v1813_v51, %v736_v9 }
 0x239   :  { %v802_v13 = vadd.f32 %v2676_v35, %v2674_v19 }
 0x23b   :  { %803 = vadd.xlane.f32.xlu1 %v802_v13 }
 0x2a4   :  { %v795_v44 = vpop.xlane.xlu1 %794 }
 0x2a5   :  { %v806_v29 = vmul.f32 0.00390625, %v795_v44 }
 0x2a7   :  { %v798_v24 = vpop.xlane.xlu0 %797  ;;  %v810_v9 = vmul.f32 %v1911_v41, %v806_v29 }
 0x2a8   :  { %v807_v3 = vmul.f32 0.00390625, %v798_v24 }
 0x2a9   :  { %v815_v50 = vsel %vm814_vm5, %v810_v9, 0.0 }
 0x2aa   :  { %v811_v34 = vmul.f32 %v1910_v52, %v807_v3 }
 0x2ac   :  { %v816_v25 = vsel %vm814_vm5, %v811_v34, 0.0 }
 0x2ad   :  { %v817_v58 = vadd.f32 %v816_v25, %v815_v50 }
 0x2af   :  { %v801_v2 = vpop.xlane.xlu0 %800 }
 0x2b0   :  { %v808_v18 = vmul.f32 0.00390625, %v801_v2 }
 0x2b2   :  { %v812_v63 = vmul.f32 %v1912_v53, %v808_v18 }
 0x2b4   :  { %v818_v33 = vsel %vm814_vm5, %v812_v63, 0.0 }
 0x2b5   :  { %v819_v13 = vadd.f32 %v818_v33, %v817_v58 }
 0x2c4   :  { %v804_v47 = vpop.xlane.xlu1 %803 }
 0x2c5   :  { %v809_v15 = vmul.f32 0.00390625, %v804_v47 }
 0x2c7   :  { %v813_v51 = vmul.f32 %v1913_v11, %v809_v15 }
 0x2c9   :  { %v820_v24 = vsel %vm814_vm5, %v813_v51, 0.0 }
 0x2ca   :  { %v821_v44 = vadd.f32 %v820_v24, %v819_v13 }
 0x2cc   :  { %v822_v2 = vrot.slane %v821_v44, 4 }
 0x2ce   :  { %v823_v3 = vadd.f32 %v822_v2, %v821_v44 }
 0x2d0   :  { %v824_v29 = vrot.slane %v823_v3, 2 }
 0x2d2   :  { %v825_v18 = vadd.f32 %v824_v29, %v823_v3 }
 0x2d4   :  { %v826_v34 = vrot.slane %v825_v18, 1 }
 0x2d6   :  { %v827_v1 = vadd.f32 %v826_v34, %v825_v18 }
 0x2d8   :  { %v828_v9 = vmax.f32 %v827_v1, 0.0 }
 0x2da   :  { %830 = vrot.lane.b32.xlu0 %v828_v9, %s1963_s18 }
 0x34c   :  { %v831_v63 = vpop.permute.xlu0 %830 }
 0x34d   :  { %v836_v25 = vmul.f32 %v1913_v11, %v831_v63  ;;  %v834_v47 = vmul.f32 %v1910_v52, %v831_v63  ;;  %v835_v50 = vmul.f32 %v1912_v53, %v831_v63  ;;  %v833_v33 = vmul.f32 %v1911_v41, %v831_v63 }
 0x34f   :  { %847 = vrot.lane.b32.xlu1 %v836_v25, %s1964_s19  ;;  %843 = vrot.lane.b32.xlu0 %v834_v47, %s1964_s19 }
 0x353   :  { %845 = vrot.lane.b32.xlu1 %v835_v50, %s1964_s19 }
 0x357   :  { %841 = vrot.lane.b32.xlu1 %v833_v33, %s1964_s19 }
 0x3c1   :  { %v848_v15 = vpop.permute.xlu1 %847  ;;  %v844_v58 = vpop.permute.xlu0 %843 }
 0x3c2   :  { %v863_v1 = vsel %vm853_vm6, %v848_v15, 0.0  ;;  %v857_v52 = vsel %vm853_vm6, %v844_v58, 0.0 }
 0x3c3   :  { %864 = vadd.xlane.f32.xlu0 %v863_v1 }
 0x3c5   :  { %v846_v51 = vpop.permute.xlu1 %845 }
 0x3c6   :  { %v860_v11 = vsel %vm853_vm6, %v846_v51, 0.0 }
 0x3c7   :  { %858 = vadd.xlane.f32.xlu0 %v857_v52  ;;  %861 = vadd.xlane.f32.xlu1 %v860_v11 }
 0x3c9   :  { %v842_v13 = vpop.permute.xlu1 %841 }
 0x3ca   :  { %v854_v53 = vsel %vm853_vm6, %v842_v13, 0.0 }
 0x3cb   :  { %855 = vadd.xlane.f32.xlu0 %v854_v53 }
 0x44c   :  { %v865_v41 = vpop.xlane.xlu0 %864 }
 0x44d   :  { %v1675_v24 = vmul.f32 -1.442695, %v865_v41 }
 0x44f   :  { %1814 = vpow2.f32 %v1675_v24 }
 0x450   :  { %v859_v44 = vpop.xlane.xlu0 %858  ;;  %v862_v2 = vpop.xlane.xlu1 %861 }
 0x451   :  { %v1673_v3 = vmul.f32 -1.442695, %v859_v44  ;;  %v1674_v29 = vmul.f32 -1.442695, %v862_v2 }
 0x453   :  { %1816 = vpow2.f32 %v1673_v3 }
 0x454   :  { %1818 = vpow2.f32 %v1674_v29  ;;  %v856_v18 = vpop.xlane.xlu0 %855  ;;  %v1917_v29 = vld [vmem:[%s3138_s1 + $0x18] sm:$0xff] }
 0x455   :  { %v1672_v34 = vmul.f32 -1.442695, %v856_v18 }
 0x457   :  { %1820 = vpow2.f32 %v1672_v34 }
 0x45c   :  { %v1815_v9 = vpop.eup %1814 }
 0x45d   :  { %v881_v63 = vadd.f32 1.0, %v1815_v9 }
 0x45f   :  { %1822 = vrcp.f32 %v881_v63 }
 0x460   :  { %v1817_v25 = vpop.eup %1816 }
 0x461   :  { %v1819_v47 = vpop.eup %1818  ;;  %v879_v50 = vadd.f32 1.0, %v1817_v25 }
 0x462   :  { %v880_v33 = vadd.f32 1.0, %v1819_v47 }
 0x463   :  { %1824 = vrcp.f32 %v879_v50 }
 0x464   :  { %v1821_v15 = vpop.eup %1820  ;;  %1826 = vrcp.f32 %v880_v33 }
 0x465   :  { %v878_v1 = vadd.f32 1.0, %v1821_v15 }
 0x467   :  { %1828 = vrcp.f32 %v878_v1 }
 0x46c   :  { %v1823_v58 = vpop.eup %1822 }
 0x46d   :  { %v897_v51 = vmul.f32 %v1823_v58, %v2676_v35  ;;  %v896_v52 = vmul.f32 %v1823_v58, %v2674_v19  ;;  %v35_v19 = vld [vmem:[%s3140_s3] sm:$0xff] }
 0x46f   :  { %931 = vmatprep.subr.mxu1 %v897_v51 }
 0x470   :  { %v1825_v11 = vpop.eup %1824  ;;  %932 = vmatpush1.msra.mxu1 %v896_v52 }
 0x471   :  { %v1827_v13 = vpop.eup %1826  ;;  %v893_v44 = vmul.f32 %v1825_v11, %v2664_v54  ;;  %v892_v2 = vmul.f32 %v1825_v11, %v2661_v49  ;;  %v1677_v49 = vld [vmem:[%s3137_s0 + $0x10] sm:$0xff]  ;;  %v1915_v54 = vld [vmem:[%s3138_s1 + $0x8] sm:$0xff] }
 0x472   :  { %v895_v53 = vmul.f32 %v1827_v13, %v2670_v62  ;;  %v894_v41 = vmul.f32 %v1827_v13, %v2668_v31  ;;  %v1678_v31 = vld [vmem:[%s3137_s0 + $0x18] sm:$0xff]  ;;  %v1916_v62 = vld [vmem:[%s3138_s1 + $0x10] sm:$0xff] }
 0x474   :  { %v1829_v24 = vpop.eup %1828  ;;  %933 = vmatprep.subr.mxu1 %v895_v53  ;;  %v3221_v53 = vld [vmem:[#allocation5_spill] sm:$0xff] }
 0x475   :  { %934 = vmatpush1.msra.mxu1 %v894_v41  ;;  %v891_v3 = vmul.f32 %v1829_v24, %v2656_v8  ;;  %v890_v35 = vmul.f32 %v1829_v24, %v2653_v59  ;;  %v3218_v59 = vmov 0.0   ;;  %v1914_v8 = vld [vmem:[%s3138_s1] sm:$0xff] }
 0x476   :  { %935 = vmatprep.subr.mxu1 %v893_v44 }
 0x477   :  { %936 = vmatpush1.msra.mxu1 %v892_v2 }
 0x478   :  { %937 = vmatprep.subr.mxu1 %v891_v3  ;;  %v3222_v3 = vld [vmem:[#allocation6_spill] sm:$0xff] }
 0x479   :  { %938 = vmatpush1.msra.mxu1 %v890_v35 }
 0x47a   :  { %1676 = vmatmul.mubr.msk.f32.vlgmr.msra.gmra.mxu1 %vm903_vm7, %v35_v19  ;;  %1015 = vmatprep.subr.mxu1 %v1678_v31 }
 0x47b   :  { %1016 = vmatpush1.msra.mxu1 %v1677_v49  ;;  %1049 = vmatprep.mubr.f32.mxu1 %v3218_v59 }
 0x47e   :  { %1679 = vmatmul.mubr.msk.f32.vlgmr.msra.gmra.mxu1 %vm64_vm0, %v1914_v8 }
 0x47f   :  { %1055 = vmatprep.mubr.f32.mxu1 %v3218_v59 }
 0x482   :  { %1680 = vmatmul.mubr.msk.f32.gmra.mxu1 %vm64_vm0, %v1915_v54 }
 0x483   :  { %1061 = vmatprep.mubr.f32.mxu1 %v3218_v59 }
 0x486   :  { %1681 = vmatmul.mubr.msk.f32.gmra.mxu1 %vm64_vm0, %v1916_v62 }
 0x487   :  { %1067 = vmatprep.mubr.f32.mxu1 %v3218_v59 }
 0x48a   :  { %1682 = vmatmul.mubr.msk.f32.gmra.mxu1 %vm64_vm0, %v1917_v29 }
 0x53a   :  { %v2743_v18 = vpop.f32.mrf.mxu1 }
 0x53b   :  { %3219 = vst [vmem:[#allocation28_spill] sm:$0xff] %v2743_v18 }
 0x53c   :  { %v2745_v34 = vpop.f32.mrf.mxu1 }
 0x53d   :  { %3220 = vst [vmem:[#allocation29_spill] sm:$0xff] %v2745_v34 }
 0x53e   :  { %v1051_v9 = vpop.f32.mrf.mxu1 }
 0x53f   :  { %v1052_v63 = vadd.f32 %v1051_v9, %v2109_v22 }
 0x540   :  { %v1053_v25 = vpop.f32.mrf.mxu1 }
 0x541   :  { %v1683_v47 = vmul.f32 -1.442695, %v1052_v63  ;;  %v1054_v50 = vadd.f32 %v1053_v25, %v2109_v22 }
 0x542   :  { %v1057_v33 = vpop.f32.mrf.mxu1 }
 0x543   :  { %1830 = vpow2.f32 %v1683_v47  ;;  %v1684_v15 = vmul.f32 -1.442695, %v1054_v50  ;;  %v1058_v1 = vadd.f32 %v1057_v33, %v2113_v28 }
 0x544   :  { %v1059_v58 = vpop.f32.mrf.mxu1 }
 0x545   :  { %1832 = vpow2.f32 %v1684_v15  ;;  %v1685_v51 = vmul.f32 -1.442695, %v1058_v1  ;;  %v1060_v52 = vadd.f32 %v1059_v58, %v2113_v28 }
 0x546   :  { %v1063_v11 = vpop.f32.mrf.mxu1 }
 0x547   :  { %1834 = vpow2.f32 %v1685_v51  ;;  %v1686_v13 = vmul.f32 -1.442695, %v1060_v52  ;;  %v1064_v41 = vadd.f32 %v1063_v11, %v3221_v53 }
 0x548   :  { %v1065_v24 = vpop.f32.mrf.mxu1 }
 0x549   :  { %1836 = vpow2.f32 %v1686_v13  ;;  %v1687_v44 = vmul.f32 -1.442695, %v1064_v41  ;;  %v1066_v22 = vadd.f32 %v1065_v24, %v3221_v53 }
 0x54a   :  { %v1069_v2 = vpop.f32.mrf.mxu1 }
 0x54b   :  { %1838 = vpow2.f32 %v1687_v44  ;;  %v1070_v35 = vadd.f32 %v1069_v2, %v3222_v3  ;;  %v1688_v19 = vmul.f32 -1.442695, %v1066_v22 }
 0x54c   :  { %v1071_v49 = vpop.f32.mrf.mxu1 }
 0x54d   :  { %v1689_v31 = vmul.f32 -1.442695, %v1070_v35  ;;  %1840 = vpow2.f32 %v1688_v19  ;;  %v1072_v28 = vadd.f32 %v1071_v49, %v3222_v3 }
 0x54f   :  { %1842 = vpow2.f32 %v1689_v31  ;;  %v1690_v9 = vmul.f32 -1.442695, %v1072_v28 }
 0x550   :  { %v1831_v59 = vpop.eup %1830 }
 0x551   :  { %v1098_v8 = vadd.f32 1.0, %v1831_v59 }
 0x552   :  { %v1833_v54 = vpop.eup %1832 }
 0x553   :  { %1844 = vrcp.f32 %v1098_v8  ;;  %v1099_v62 = vadd.f32 1.0, %v1833_v54 }
 0x554   :  { %v1835_v29 = vpop.eup %1834 }
 0x555   :  { %1846 = vrcp.f32 %v1099_v62  ;;  %v1100_v25 = vadd.f32 1.0, %v1835_v29 }
 0x556   :  { %v1837_v47 = vpop.eup %1836  ;;  %1848 = vpow2.f32 %v1690_v9 }
 0x557   :  { %v1101_v15 = vadd.f32 1.0, %v1837_v47  ;;  %1850 = vrcp.f32 %v1100_v25 }
 0x558   :  { %v1839_v33 = vpop.eup %1838 }
 0x559   :  { %v1102_v58 = vadd.f32 1.0, %v1839_v33  ;;  %1852 = vrcp.f32 %v1101_v15 }
 0x55a   :  { %v1841_v51 = vpop.eup %1840 }
 0x55b   :  { %1854 = vrcp.f32 %v1102_v58  ;;  %v1103_v53 = vadd.f32 1.0, %v1841_v51 }
 0x55c   :  { %v1843_v11 = vpop.eup %1842 }
 0x55d   :  { %v1104_v44 = vadd.f32 1.0, %v1843_v11  ;;  %1856 = vrcp.f32 %v1103_v53  ;;  %v3223_v53 = vld [vmem:[#allocation13_spill] sm:$0xff] }
 0x55f   :  { %1858 = vrcp.f32 %v1104_v44 }
 0x560   :  { %v1845_v13 = vpop.eup %1844 }
 0x561   :  { %v1122_v24 = vmul.f32 %v1845_v13, %v1052_v63 }
 0x562   :  { %v1847_v2 = vpop.eup %1846 }
 0x563   :  { %1162 = vrot.lane.b32.xlu0 %v1122_v24, %s1958_s29  ;;  %1130 = vrot.lane.b32.xlu1 %v1122_v24, %s1957_s2  ;;  %v1849_v3 = vpop.eup %1848  ;;  %v1123_v19 = vmul.f32 %v1847_v2, %v1054_v50  ;;  %v1322_v33 = vmul.f32 %v1122_v24, %v2223_v45  ;;  %v1242_v44 = vmul.f32 %v1122_v24, %v3223_v53 }
 0x564   :  { %v1851_v31 = vpop.eup %1850  ;;  %v1105_v8 = vadd.f32 1.0, %v1849_v3  ;;  %v1202_v2 = vmul.f32 %v1122_v24, %v2448_v39 }
 0x565   :  { %v1124_v59 = vmul.f32 %v1851_v31, %v1058_v1  ;;  %v2802_v31 = vmul.f32 %v1123_v19, %v2223_v45 }
 0x566   :  { %v1853_v49 = vpop.eup %1852  ;;  %1860 = vrcp.f32 %v1105_v8  ;;  %v1203_v8 = vmul.f32 %v1123_v19, %v2448_v39 }
 0x567   :  { %1170 = vrot.lane.b32.xlu0 %v1123_v19, %s1958_s29  ;;  %1138 = vrot.lane.b32.xlu1 %v1123_v19, %s1957_s2  ;;  %v1125_v63 = vmul.f32 %v1853_v49, %v1060_v52  ;;  %v1243_v49 = vmul.f32 %v1123_v19, %v3223_v53  ;;  %v1204_v24 = vmul.f32 %v1124_v59, %v2469_v48  ;;  %v3226_v53 = vld [vmem:[#allocation9_spill] sm:$0xff] }
 0x568   :  { %v1855_v54 = vpop.eup %1854 }
 0x569   :  { %v2761_v62 = vmul.f32 %v1855_v54, %v1064_v41  ;;  %v2820_v19 = vmul.f32 %v1125_v63, %v2202_v40 }
 0x56a   :  { %v1857_v50 = vpop.eup %1856 }
 0x56b   :  { %1132 = vrot.lane.b32.xlu0 %v1124_v59, %s1957_s2  ;;  %1164 = vrot.lane.b32.xlu1 %v1124_v59, %s1958_s29  ;;  %v2769_v1 = vmul.f32 %v1857_v50, %v1066_v22 }
 0x56c   :  { %v1859_v29 = vpop.eup %1858 }
 0x56d   :  { %v2771_v9 = vmul.f32 %v1859_v29, %v1070_v35 }
 0x56f   :  { %1134 = vrot.lane.b32.xlu0 %v2761_v62, %s1957_s2  ;;  %1140 = vrot.lane.b32.xlu1 %v1125_v63, %s1957_s2 }
 0x573   :  { %1166 = vrot.lane.b32.xlu0 %v2761_v62, %s1958_s29  ;;  %1172 = vrot.lane.b32.xlu1 %v1125_v63, %s1958_s29  ;;  %v1861_v52 = vpop.eup %1860 }
 0x574   :  { %v2781_v41 = vmul.f32 %v1861_v52, %v1072_v28  ;;  %v3224_v52 = vld [vmem:[#allocation8_spill] sm:$0xff] }
 0x575   :  { %v2817_v39 = vmul.f32 %v1125_v63, %v3224_v52 }
 0x577   :  { %1136 = vrot.lane.b32.xlu0 %v2771_v9, %s1957_s2  ;;  %1142 = vrot.lane.b32.xlu1 %v2769_v1, %s1957_s2 }
 0x57b   :  { %1168 = vrot.lane.b32.xlu0 %v2771_v9, %s1958_s29  ;;  %1174 = vrot.lane.b32.xlu1 %v2769_v1, %s1958_s29 }
 0x57f   :  { %1144 = vrot.lane.b32.xlu1 %v2781_v41, %s1957_s2 }
 0x583   :  { %1176 = vrot.lane.b32.xlu1 %v2781_v41, %s1958_s29 }
 0x5d5   :  { %v1163_v22 = vpop.permute.xlu0 %1162  ;;  %v1131_v35 = vpop.permute.xlu1 %1130 }
 0x5d9   :  { %v1171_v25 = vpop.permute.xlu0 %1170  ;;  %v1139_v47 = vpop.permute.xlu1 %1138 }
 0x5da   :  { %v1178_v15 = vsel %vm292_vm2, %v1163_v22, %v1171_v25  ;;  %v1182_v58 = vsel %vm292_vm2, %v1171_v25, %v1163_v22  ;;  %v1146_v28 = vsel %vm240_vm1, %v1131_v35, %v1139_v47  ;;  %v1150_v51 = vsel %vm240_vm1, %v1139_v47, %v1131_v35  ;;  %v3225_v47 = vld [vmem:[#allocation11_spill] sm:$0xff] }
 0x5db   :  { %v1154_v11 = vmul.f32 %v1150_v51, %v2255_v0  ;;  %v1155_v13 = vmul.f32 %v1146_v28, %v2259_v10  ;;  %v1186_v3 = vmul.f32 %v1178_v15, %v2269_v27  ;;  %v1187_v54 = vmul.f32 %v1182_v58, %v2271_v30 }
 0x5dc   :  { %v1244_v22 = vmul.f32 %v1124_v59, %v3224_v52  ;;  %v2809_v35 = vmul.f32 %v1124_v59, %v2202_v40  ;;  %v2824_v58 = vmul.f32 %v2761_v62, %v2215_v42  ;;  %v1205_v59 = vmul.f32 %v1125_v63, %v2469_v48  ;;  %v3227_v52 = vld [vmem:[#allocation10_spill] sm:$0xff] }
 0x5dd   :  { %v1133_v50 = vpop.permute.xlu0 %1132  ;;  %v1165_v29 = vpop.permute.xlu1 %1164  ;;  %v1194_v25 = vmul.f32 %v1154_v11, %v2391_v16  ;;  %v1195_v45 = vmul.f32 %v1155_v13, %v2391_v16  ;;  %v1234_v15 = vmul.f32 %v1154_v11, %v3225_v47  ;;  %v1235_v28 = vmul.f32 %v1155_v13, %v3225_v47 }
 0x5de   :  { %v1258_v34 = vmul.f32 %v1186_v3, %v3226_v53  ;;  %v1218_v60 = vmul.f32 %v1186_v3, %v2476_v21  ;;  %v1219_v47 = vmul.f32 %v1187_v54, %v2476_v21  ;;  %v1314_v20 = vmul.f32 %v1154_v11, %v3227_v52 }
 0x5df   :  { %v1250_v51 = vadd.f32 %v1242_v44, %v1234_v15  ;;  %v1211_v16 = vadd.f32 %v1203_v8, %v1195_v45  ;;  %v1210_v18 = vadd.f32 %v1202_v2, %v1194_v25  ;;  %v2833_v40 = vmul.f32 %v2761_v62, %v2225_v14 }
 0x5e0   :  { %v1251_v44 = vadd.f32 %v1243_v49, %v1235_v28  ;;  %v2843_v11 = vmul.f32 %v2769_v1, %v2215_v42  ;;  %v1206_v25 = vmul.f32 %v2761_v62, %v2483_v6  ;;  %v1259_v45 = vmul.f32 %v1187_v54, %v3226_v53 }
 0x5e1   :  { %v1141_v32 = vpop.permute.xlu1 %1140  ;;  %v1266_v63 = vadd.f32 %v1258_v34, %v1250_v51  ;;  %v1135_v2 = vpop.permute.xlu0 %1134  ;;  %v2849_v15 = vadd.f32 %v1219_v47, %v1211_v16  ;;  %v1207_v34 = vmul.f32 %v2769_v1, %v2483_v6  ;;  %v1330_v51 = vadd.f32 %v1322_v33, %v1314_v20 }
 0x5e2   :  { %v1147_v5 = vsel %vm240_vm1, %v1133_v50, %v1141_v32  ;;  %v1151_v48 = vsel %vm240_vm1, %v1141_v32, %v1133_v50  ;;  %v2851_v32 = vadd.f32 %v1218_v60, %v1210_v18  ;;  %v3228_v50 = vld [vmem:[#allocation7_spill] sm:$0xff]  ;;  %v1267_v18 = vadd.f32 %v1259_v45, %v1251_v44  ;;  %v3229_v44 = vld [vmem:[#allocation17_spill] sm:$0xff] }
 0x5e3   :  { %v1156_v8 = vmul.f32 %v1151_v48, %v2255_v0  ;;  %v1157_v21 = vmul.f32 %v1147_v5, %v2259_v10  ;;  %1274 = vrot.lane.b32.xlu0 %v1266_v63, %s1961_s6  ;;  %v1315_v5 = vmul.f32 %v1155_v13, %v3227_v52  ;;  %v1338_v16 = vmul.f32 %v1186_v3, %v2221_v43 }
 0x5e4   :  { %v1339_v47 = vmul.f32 %v1187_v54, %v2221_v43 }
 0x5e5   :  { %v1196_v49 = vmul.f32 %v1156_v8, %v2432_v61  ;;  %v1197_v42 = vmul.f32 %v1157_v21, %v2432_v61  ;;  %v1236_v28 = vmul.f32 %v1156_v8, %v3228_v50  ;;  %v1173_v62 = vpop.permute.xlu1 %1172  ;;  %v2868_v61 = vmul.f32 %v2771_v9, %v2219_v17  ;;  %v1167_v48 = vpop.permute.xlu0 %1166 }
 0x5e6   :  { %v1179_v53 = vsel %vm292_vm2, %v1165_v29, %v1173_v62  ;;  %v1183_v60 = vsel %vm292_vm2, %v1173_v62, %v1165_v29  ;;  %v1237_v20 = vmul.f32 %v1157_v21, %v3228_v50  ;;  %v1346_v50 = vadd.f32 %v1338_v16, %v1330_v51 }
 0x5e7   :  { %v1188_v6 = vmul.f32 %v1179_v53, %v2269_v27  ;;  %v1189_v13 = vmul.f32 %v1183_v60, %v2271_v30  ;;  %1282 = vrot.lane.b32.xlu0 %v1267_v18, %s1961_s6  ;;  %v1212_v33 = vadd.f32 %v1204_v24, %v1196_v49  ;;  %v1213_v52 = vadd.f32 %v1205_v59, %v1197_v42 }
 0x5e8   :  { %v1252_v29 = vadd.f32 %v1244_v22, %v1236_v28  ;;  %v1331_v53 = vadd.f32 %v2802_v31, %v1315_v5  ;;  %v1317_v42 = vmul.f32 %v1157_v21, %v2198_v12  ;;  %v1208_v16 = vmul.f32 %v2771_v9, %v2520_v23 }
 0x5e9   :  { %v1220_v3 = vmul.f32 %v1188_v6, %v2499_v46  ;;  %v1221_v63 = vmul.f32 %v1189_v13, %v2499_v46  ;;  %v1260_v45 = vmul.f32 %v1188_v6, %v3229_v44  ;;  %v1143_v62 = vpop.permute.xlu1 %1142  ;;  %v1261_v24 = vmul.f32 %v1189_v13, %v3229_v44 }
 0x5ea   :  { %v1148_v43 = vsel %vm240_vm1, %v1135_v2, %v1143_v62  ;;  %v1152_v54 = vsel %vm240_vm1, %v1143_v62, %v1135_v2  ;;  %v1316_v46 = vmul.f32 %v1156_v8, %v2198_v12  ;;  %v1253_v2 = vadd.f32 %v2817_v39, %v1237_v20  ;;  %v3230_v39 = vld [vmem:[#allocation16_spill] sm:$0xff]  ;;  %v3231_v62 = vld [vmem:[#allocation14_spill] sm:$0xff] }
 0x5eb   :  { %v1158_v22 = vmul.f32 %v1152_v54, %v2255_v0  ;;  %v1159_v59 = vmul.f32 %v1148_v43, %v2259_v10  ;;  %v1268_v49 = vadd.f32 %v1260_v45, %v1252_v29  ;;  %1354 = vrot.lane.b32.xlu0 %v1346_v50, %s1962_s9  ;;  %v2887_v31 = vadd.f32 %v1220_v3, %v1212_v33  ;;  %v1137_v33 = vpop.permute.xlu0 %1136 }
 0x5ec   :  { %v2889_v5 = vadd.f32 %v1221_v63, %v1213_v52  ;;  %v1347_v21 = vadd.f32 %v1339_v47, %v1331_v53  ;;  %v1340_v20 = vmul.f32 %v1188_v6, %v3230_v39  ;;  %v1269_v29 = vadd.f32 %v1261_v24, %v1253_v2 }
 0x5ed   :  { %v1198_v28 = vmul.f32 %v1158_v22, %v2454_v38  ;;  %v1199_v51 = vmul.f32 %v1159_v59, %v2454_v38  ;;  %v1238_v60 = vmul.f32 %v1158_v22, %v2183_v36  ;;  %1276 = vrot.lane.b32.xlu1 %v1268_v49, %s1961_s6  ;;  %v1175_v18 = vpop.permute.xlu1 %1174  ;;  %v1332_v3 = vadd.f32 %v2809_v35, %v1316_v46  ;;  %v3232_v35 = vld [vmem:[#allocation15_spill] sm:$0xff]  ;;  %v3233_v46 = vld [vmem:[#allocation21_spill] sm:$0xff] }
 0x5ee   :  { %v1180_v12 = vsel %vm292_vm2, %v1167_v48, %v1175_v18  ;;  %v1184_v8 = vsel %vm292_vm2, %v1175_v18, %v1167_v48  ;;  %v1333_v63 = vadd.f32 %v2820_v19, %v1317_v42  ;;  %v1341_v54 = vmul.f32 %v1189_v13, %v3230_v39 }
 0x5ef   :  { %v1190_v38 = vmul.f32 %v1180_v12, %v2269_v27  ;;  %v1191_v52 = vmul.f32 %v1184_v8, %v2271_v30  ;;  %1362 = vrot.lane.b32.xlu0 %v1347_v21, %s1962_s9  ;;  %v1214_v44 = vadd.f32 %v1206_v25, %v1198_v28  ;;  %v1215_v48 = vadd.f32 %v1207_v34, %v1199_v51 }
 0x5f0   :  { %v1254_v47 = vadd.f32 %v2824_v58, %v1238_v60  ;;  %v1318_v50 = vmul.f32 %v1158_v22, %v3232_v35  ;;  %v1239_v49 = vmul.f32 %v1159_v59, %v2183_v36  ;;  %v1169_v22 = vpop.permute.xlu0 %1168  ;;  %v3234_v60 = vld [vmem:[#allocation12_spill] sm:$0xff]  ;;  %v1349_v21 = vadd.f32 %v1341_v54, %v1333_v63  ;;  %v3235_v63 = vld [vmem:[#allocation19_spill] sm:$0xff] }
 0x5f1   :  { %v1222_v45 = vmul.f32 %v1190_v38, %v2522_v57  ;;  %v1223_v6 = vmul.f32 %v1191_v52, %v2522_v57  ;;  %v1262_v53 = vmul.f32 %v1190_v38, %v3231_v62  ;;  %1284 = vrot.lane.b32.xlu1 %v1269_v29, %s1961_s6  ;;  %v1145_v43 = vpop.permute.xlu1 %1144  ;;  %v1348_v57 = vadd.f32 %v1340_v20, %v1332_v3 }
 0x5f2   :  { %v1149_v19 = vsel %vm240_vm1, %v1137_v33, %v1145_v43  ;;  %v1153_v25 = vsel %vm240_vm1, %v1145_v43, %v1137_v33  ;;  %v1342_v42 = vmul.f32 %v1190_v38, %v3233_v46  ;;  %v1334_v36 = vadd.f32 %v2833_v40, %v1318_v50 }
 0x5f3   :  { %v1160_v58 = vmul.f32 %v1153_v25, %v2255_v0  ;;  %v1161_v34 = vmul.f32 %v1149_v19, %v2259_v10  ;;  %v1270_v24 = vadd.f32 %v1262_v53, %v1254_v47  ;;  %v2923_v2 = vadd.f32 %v1222_v45, %v1214_v44  ;;  %v3238_v53 = vld [vmem:[#allocation22_spill] sm:$0xff] }
 0x5f4   :  { %v2925_v13 = vadd.f32 %v1223_v6, %v1215_v48  ;;  %v1209_v10 = vmul.f32 %v2781_v41, %v2520_v23  ;;  %v1263_v39 = vmul.f32 %v1191_v52, %v3231_v62  ;;  %v1255_v23 = vadd.f32 %v2843_v11, %v1239_v49 }
 0x5f5   :  { %v1200_v28 = vmul.f32 %v1160_v58, %v2510_v37  ;;  %v1201_v51 = vmul.f32 %v1161_v34, %v2510_v37  ;;  %v1240_v18 = vmul.f32 %v1160_v58, %v3234_v60  ;;  %1356 = vrot.lane.b32.xlu1 %v1348_v57, %s1962_s9  ;;  %v1177_v0 = vpop.permute.xlu1 %1176  ;;  %1278 = vrot.lane.b32.xlu0 %v1270_v24, %s1961_s6 }
 0x5f6   :  { %v1181_v12 = vsel %vm292_vm2, %v1169_v22, %v1177_v0  ;;  %v1185_v8 = vsel %vm292_vm2, %v1177_v0, %v1169_v22  ;;  %v1319_v37 = vmul.f32 %v1159_v59, %v3232_v35  ;;  %v1350_v40 = vadd.f32 %v1342_v42, %v1334_v36  ;;  %v3236_v59 = vld [vmem:[#allocation18_spill] sm:$0xff] }
 0x5f7   :  { %v1192_v20 = vmul.f32 %v1181_v12, %v2269_v27  ;;  %v1193_v33 = vmul.f32 %v1185_v8, %v2271_v30  ;;  %v1216_v38 = vadd.f32 %v1208_v16, %v1200_v28  ;;  %v1217_v29 = vadd.f32 %v1209_v10, %v1201_v51 }
 0x5f8   :  { %v1256_v3 = vadd.f32 %v2868_v61, %v1240_v18  ;;  %v1327_v27 = vmul.f32 %v2769_v1, %v2225_v14  ;;  %v1343_v30 = vmul.f32 %v1191_v52, %v3233_v46  ;;  %v1320_v11 = vmul.f32 %v1160_v58, %v3236_v59 }
 0x5f9   :  { %v1224_v44 = vmul.f32 %v1192_v20, %v2540_v55  ;;  %v1225_v48 = vmul.f32 %v1193_v33, %v2540_v55  ;;  %v1264_v47 = vmul.f32 %v1192_v20, %v3235_v63  ;;  %1364 = vrot.lane.b32.xlu1 %v1349_v21, %s1962_s9  ;;  %1358 = vrot.lane.b32.xlu0 %v1350_v40, %s1962_s9  ;;  %v3237_v55 = vld [vmem:[#allocation20_spill] sm:$0xff] }
 0x5fa   :  { %v1271_v16 = vadd.f32 %v1263_v39, %v1255_v23  ;;  %v1328_v62 = vmul.f32 %v2771_v9, %v3237_v55  ;;  %v1344_v43 = vmul.f32 %v1192_v20, %v3238_v53  ;;  %v1335_v54 = vadd.f32 %v1327_v27, %v1319_v37  ;;  %v3239_v37 = vld [vmem:[#allocation26_spill] sm:$0xff] }
 0x5fb   :  { %v1272_v45 = vadd.f32 %v1264_v47, %v1256_v3  ;;  %v2954_v61 = vadd.f32 %v1224_v44, %v1216_v38  ;;  %v2956_v6 = vadd.f32 %v1225_v48, %v1217_v29  ;;  %v1241_v14 = vmul.f32 %v1161_v34, %v3234_v60  ;;  %v3240_v29 = vld [vmem:[#allocation24_spill] sm:$0xff] }
 0x5fc   :  { %v1336_v1 = vadd.f32 %v1328_v62, %v1320_v11  ;;  %v1249_v52 = vmul.f32 %v2781_v41, %v2219_v17  ;;  %v1265_v35 = vmul.f32 %v1193_v33, %v3235_v63  ;;  %v1351_v50 = vadd.f32 %v1343_v30, %v1335_v54 }
 0x5fd   :  { %1286 = vrot.lane.b32.xlu1 %v1271_v16, %s1961_s6  ;;  %1280 = vrot.lane.b32.xlu0 %v1272_v45, %s1961_s6  ;;  %v1321_v9 = vmul.f32 %v1161_v34, %v3236_v59  ;;  %v1329_v58 = vmul.f32 %v2781_v41, %v3237_v55  ;;  %v1345_v57 = vmul.f32 %v1193_v33, %v3238_v53 }
 0x5fe   :  { %v1352_v19 = vadd.f32 %v1344_v43, %v1336_v1  ;;  %v1257_v25 = vadd.f32 %v1249_v52, %v1241_v14  ;;  %v3241_v1 = vld [vmem:[#allocation23_spill] sm:$0xff] }
 0x5ff   :  { %v1337_v49 = vadd.f32 %v1329_v58, %v1321_v9 }
 0x600   :  { %v1273_v24 = vadd.f32 %v1265_v35, %v1257_v25 }
 0x601   :  { %1366 = vrot.lane.b32.xlu1 %v1351_v50, %s1962_s9  ;;  %1360 = vrot.lane.b32.xlu0 %v1352_v19, %s1962_s9  ;;  %v1353_v17 = vadd.f32 %v1345_v57, %v1337_v49 }
 0x605   :  { %1288 = vrot.lane.b32.xlu1 %v1273_v24, %s1961_s6 }
 0x609   :  { %1368 = vrot.lane.b32.xlu1 %v1353_v17, %s1962_s9 }
 0x655   :  { %v1275_v46 = vpop.permute.xlu0 %1274 }
 0x659   :  { %v1283_v42 = vpop.permute.xlu0 %1282 }
 0x65a   :  { %v1290_v34 = vsel %vm523_vm3, %v1275_v46, %v1283_v42  ;;  %v1294_v22 = vsel %vm523_vm3, %v1283_v42, %v1275_v46 }
 0x65b   :  { %v1298_v41 = vmul.f32 %v1294_v22, %v2565_v7  ;;  %v1299_v60 = vmul.f32 %v1290_v34, %v2567_v4 }
 0x65d   :  { %v1355_v28 = vpop.permute.xlu0 %1354  ;;  %v1306_v12 = vadd.f32 %v1298_v41, %v2851_v32  ;;  %v1307_v8 = vadd.f32 %v1299_v60, %v2849_v15  ;;  %v3242_v60 = vld [vmem:[#allocation25_spill] sm:$0xff] }
 0x65f   :  { %v1277_v51 = vpop.permute.xlu1 %1276 }
 0x661   :  { %v1363_v18 = vpop.permute.xlu0 %1362 }
 0x662   :  { %v1370_v0 = vsel %vm670_vm4, %v1355_v28, %v1363_v18  ;;  %v1374_v10 = vsel %vm670_vm4, %v1363_v18, %v1355_v28 }
 0x663   :  { %v1285_v36 = vpop.permute.xlu1 %1284  ;;  %v1378_v21 = vmul.f32 %v1370_v0, %v2574_v26  ;;  %v1379_v39 = vmul.f32 %v1374_v10, %v3239_v37 }
 0x664   :  { %v1295_v20 = vsel %vm523_vm3, %v1285_v36, %v1277_v51  ;;  %v1291_v40 = vsel %vm523_vm3, %v1277_v51, %v1285_v36 }
 0x665   :  { %v1386_v33 = vadd.f32 %v1378_v21, %v1306_v12  ;;  %v1387_v23 = vadd.f32 %v1379_v39, %v1307_v8  ;;  %v1300_v15 = vmul.f32 %v1295_v20, %v2565_v7  ;;  %v1301_v44 = vmul.f32 %v1291_v40, %v2567_v4 }
 0x667   :  { %v1357_v38 = vpop.permute.xlu1 %1356  ;;  %v2994_v3 = vadd.f32 %v1386_v33, %v3240_v29  ;;  %v2997_v32 = vadd.f32 %v1387_v23, %v3240_v29  ;;  %v1279_v48 = vpop.permute.xlu0 %1278  ;;  %v1308_v30 = vadd.f32 %v1300_v15, %v2887_v31  ;;  %v1309_v16 = vadd.f32 %v1301_v44, %v2889_v5 }
 0x669   :  { %v1691_v63 = vmul.f32 -1.442695, %v2994_v3  ;;  %v1692_v47 = vmul.f32 -1.442695, %v2997_v32 }
 0x66b   :  { %v1365_v27 = vpop.permute.xlu1 %1364  ;;  %1862 = vpow2.f32 %v1691_v63  ;;  %v1359_v43 = vpop.permute.xlu0 %1358 }
 0x66c   :  { %v1371_v59 = vsel %vm670_vm4, %v1357_v38, %v1365_v27  ;;  %v1375_v11 = vsel %vm670_vm4, %v1365_v27, %v1357_v38  ;;  %1864 = vpow2.f32 %v1692_v47 }
 0x66d   :  { %v1380_v45 = vmul.f32 %v1371_v59, %v2574_v26  ;;  %v1381_v55 = vmul.f32 %v1375_v11, %v3239_v37 }
 0x66f   :  { %v1388_v62 = vadd.f32 %v1380_v45, %v1308_v30  ;;  %v1389_v53 = vadd.f32 %v1381_v55, %v1309_v16  ;;  %v1287_v54 = vpop.permute.xlu1 %1286  ;;  %v1281_v17 = vpop.permute.xlu0 %1280 }
 0x670   :  { %v1292_v31 = vsel %vm523_vm3, %v1279_v48, %v1287_v54  ;;  %v1296_v14 = vsel %vm523_vm3, %v1287_v54, %v1279_v48  ;;  %v3243_v48 = vld [vmem:[#allocation27_spill] sm:$0xff] }
 0x671   :  { %v3016_v52 = vadd.f32 %v1388_v62, %v3241_v1  ;;  %v3019_v35 = vadd.f32 %v1389_v53, %v3241_v1  ;;  %v1302_v5 = vmul.f32 %v1296_v14, %v2565_v7  ;;  %v1303_v50 = vmul.f32 %v1292_v31, %v2567_v4 }
 0x673   :  { %v1693_v19 = vmul.f32 -1.442695, %v3016_v52  ;;  %v1694_v25 = vmul.f32 -1.442695, %v3019_v35  ;;  %v1367_v9 = vpop.permute.xlu1 %1366  ;;  %v1310_v58 = vadd.f32 %v1302_v5, %v2923_v2  ;;  %v1311_v49 = vadd.f32 %v1303_v50, %v2925_v13  ;;  %v1361_v20 = vpop.permute.xlu0 %1360 }
 0x674   :  { %v1372_v57 = vsel %vm670_vm4, %v1359_v43, %v1367_v9  ;;  %v1376_v24 = vsel %vm670_vm4, %v1367_v9, %v1359_v43 }
 0x675   :  { %1866 = vpow2.f32 %v1693_v19  ;;  %v1382_v46 = vmul.f32 %v1372_v57, %v2574_v26  ;;  %v1383_v42 = vmul.f32 %v1376_v24, %v3239_v37 }
 0x676   :  { %1868 = vpow2.f32 %v1694_v25 }
 0x677   :  { %v1390_v34 = vadd.f32 %v1382_v46, %v1310_v58  ;;  %v1391_v22 = vadd.f32 %v1383_v42, %v1311_v49  ;;  %v1289_v28 = vpop.permute.xlu1 %1288 }
 0x678   :  { %v1293_v2 = vsel %vm523_vm3, %v1281_v17, %v1289_v28  ;;  %v1297_v51 = vsel %vm523_vm3, %v1289_v28, %v1281_v17  ;;  %v1863_v41 = vpop.eup %1862 }
 0x679   :  { %v1398_v18 = vadd.f32 %v1390_v34, %v3242_v60  ;;  %v1399_v13 = vadd.f32 %v1391_v22, %v3242_v60  ;;  %v1304_v0 = vmul.f32 %v1297_v51, %v2565_v7  ;;  %v1305_v10 = vmul.f32 %v1293_v2, %v2567_v4  ;;  %v1865_v36 = vpop.eup %1864 }
 0x67a   :  { %v1426_v12 = vadd.f32 1.0, %v1863_v41  ;;  %v1427_v8 = vadd.f32 1.0, %v1865_v36  ;;  %v1918_v41 = vld [vmem:[%s3141_s4 + $0x8] sm:$0xff] }
 0x67b   :  { %v1695_v21 = vmul.f32 -1.442695, %v1398_v18  ;;  %v1696_v39 = vmul.f32 -1.442695, %v1399_v13  ;;  %v1369_v33 = vpop.permute.xlu1 %1368  ;;  %v1312_v23 = vadd.f32 %v1304_v0, %v2954_v61  ;;  %v1313_v7 = vadd.f32 %v1305_v10, %v2956_v6  ;;  %v1920_v0 = vld [vmem:[%s3141_s4 + $0x10] sm:$0xff] }
 0x67c   :  { %1870 = vrcp.f32 %v1426_v12  ;;  %v1373_v40 = vsel %vm670_vm4, %v1361_v20, %v1369_v33  ;;  %v1377_v38 = vsel %vm670_vm4, %v1369_v33, %v1361_v20  ;;  %v1921_v33 = vld [vmem:[%s3141_s4 + $0x18] sm:$0xff] }
 0x67d   :  { %1872 = vrcp.f32 %v1427_v8  ;;  %v1384_v4 = vmul.f32 %v1373_v40, %v2574_v26  ;;  %v1385_v29 = vmul.f32 %v1377_v38, %v3239_v37 }
 0x67e   :  { %1874 = vpow2.f32 %v1695_v21 }
 0x67f   :  { %1876 = vpow2.f32 %v1696_v39  ;;  %v1392_v15 = vadd.f32 %v1384_v4, %v1312_v23  ;;  %v1393_v44 = vadd.f32 %v1385_v29, %v1313_v7 }
 0x681   :  { %v1400_v63 = vadd.f32 %v1392_v15, %v3243_v48  ;;  %v1401_v61 = vadd.f32 %v1393_v44, %v3243_v48 }
 0x682   :  { %v1867_v47 = vpop.eup %1866 }
 0x683   :  { %v1869_v27 = vpop.eup %1868  ;;  %v1428_v30 = vadd.f32 1.0, %v1867_v47  ;;  %v1697_v56 = vmul.f32 -1.442695, %v1400_v63  ;;  %v1698_v11 = vmul.f32 -1.442695, %v1401_v61 }
 0x684   :  { %v1429_v59 = vadd.f32 1.0, %v1869_v27 }
 0x685   :  { %1878 = vrcp.f32 %v1428_v30 }
 0x686   :  { %1880 = vrcp.f32 %v1429_v59 }
 0x687   :  { %1882 = vpow2.f32 %v1697_v56 }
 0x688   :  { %1884 = vpow2.f32 %v1698_v11 }
 0x689   :  { %v1871_v26 = vpop.eup %1870 }
 0x68a   :  { %v1873_v6 = vpop.eup %1872  ;;  %v3052_v37 = vmul.f32 %v1871_v26, %v2994_v3 }
 0x68b   :  { %v1875_v16 = vpop.eup %1874  ;;  %v3055_v45 = vmul.f32 %v1873_v6, %v2997_v32 }
 0x68c   :  { %v1877_v55 = vpop.eup %1876  ;;  %v1430_v62 = vadd.f32 1.0, %v1875_v16 }
 0x68d   :  { %v1431_v53 = vadd.f32 1.0, %v1877_v55  ;;  %v1458_v43 = vadd.f32 %v3055_v45, %v3052_v37 }
 0x68e   :  { %1886 = vrcp.f32 %v1430_v62 }
 0x68f   :  { %1888 = vrcp.f32 %v1431_v53  ;;  %1459 = vadd.xlane.f32.xlu0 %v1458_v43 }
 0x692   :  { %v1879_v54 = vpop.eup %1878 }
 0x693   :  { %v1881_v31 = vpop.eup %1880  ;;  %v3060_v14 = vmul.f32 %v1879_v54, %v3016_v52  ;;  %v40_v54 = vld [vmem:[%s3142_s5] sm:$0xff] }
 0x694   :  { %v1883_v3 = vpop.eup %1882  ;;  %v3063_v1 = vmul.f32 %v1881_v31, %v3019_v35 }
 0x695   :  { %v1885_v32 = vpop.eup %1884  ;;  %v1432_v5 = vadd.f32 1.0, %v1883_v3 }
 0x696   :  { %v1433_v50 = vadd.f32 1.0, %v1885_v32  ;;  %v1461_v19 = vadd.f32 %v3063_v1, %v3060_v14 }
 0x697   :  { %1890 = vrcp.f32 %v1432_v5 }
 0x698   :  { %1892 = vrcp.f32 %v1433_v50  ;;  %1462 = vadd.xlane.f32.xlu1 %v1461_v19 }
 0x69b   :  { %v1887_v25 = vpop.eup %1886 }
 0x69c   :  { %v1889_v9 = vpop.eup %1888  ;;  %v3067_v58 = vmul.f32 %v1887_v25, %v1398_v18  ;;  %v1919_v18 = vld [vmem:[%s3141_s4] sm:$0xff] }
 0x69d   :  { %v3069_v57 = vmul.f32 %v1889_v9, %v1399_v13 }
 0x69f   :  { %v1464_v52 = vadd.f32 %v3069_v57, %v3067_v58 }
 0x6a1   :  { %1465 = vadd.xlane.f32.xlu0 %v1464_v52 }
 0x6a4   :  { %v1891_v35 = vpop.eup %1890 }
 0x6a5   :  { %v1893_v24 = vpop.eup %1892  ;;  %v3073_v49 = vmul.f32 %v1891_v35, %v1400_v63  ;;  %v3244_v35 = vld [vmem:[#allocation28_spill] sm:$0xff] }
 0x6a6   :  { %v3075_v17 = vmul.f32 %v1893_v24, %v1401_v61 }
 0x6a8   :  { %v1467_v46 = vadd.f32 %v3075_v17, %v3073_v49 }
 0x6aa   :  { %1468 = vadd.xlane.f32.xlu0 %v1467_v46  ;;  %v3245_v46 = vld [vmem:[#allocation29_spill] sm:$0xff] }
 0x718   :  { %v1460_v42 = vpop.xlane.xlu0 %1459 }
 0x719   :  { %v1470_v2 = vmul.f32 0.00390625, %v1460_v42 }
 0x71b   :  { %v1474_v13 = vmul.f32 %v1919_v18, %v1470_v2 }
 0x71d   :  { %v1478_v8 = vsel %vm814_vm5, %v1474_v13, 0.0 }
 0x721   :  { %v1463_v34 = vpop.xlane.xlu1 %1462 }
 0x722   :  { %v1471_v22 = vmul.f32 0.00390625, %v1463_v34  ;;  %v1922_v34 = vld [vmem:[%s3137_s0] sm:$0xff] }
 0x724   :  { %v1475_v60 = vmul.f32 %v1918_v41, %v1471_v22 }
 0x726   :  { %v1479_v36 = vsel %vm814_vm5, %v1475_v60, 0.0 }
 0x727   :  { %v1480_v20 = vadd.f32 %v1479_v36, %v1478_v8 }
 0x72a   :  { %v1466_v28 = vpop.xlane.xlu0 %1465 }
 0x72b   :  { %v1472_v51 = vmul.f32 0.00390625, %v1466_v28  ;;  %v1923_v28 = vld [vmem:[%s3137_s0 + $0x8] sm:$0xff] }
 0x72d   :  { %v1476_v10 = vmul.f32 %v1920_v0, %v1472_v51 }
 0x72f   :  { %v1481_v21 = vsel %vm814_vm5, %v1476_v10, 0.0 }
 0x730   :  { %v1482_v40 = vadd.f32 %v1481_v21, %v1480_v20 }
 0x733   :  { %v1469_v12 = vpop.xlane.xlu0 %1468 }
 0x734   :  { %v1473_v39 = vmul.f32 0.00390625, %v1469_v12 }
 0x736   :  { %v1477_v23 = vmul.f32 %v1921_v33, %v1473_v39 }
 0x738   :  { %v1483_v38 = vsel %vm814_vm5, %v1477_v23, 0.0 }
 0x739   :  { %v1484_v7 = vadd.f32 %v1483_v38, %v1482_v40 }
 0x73b   :  { %v1485_v4 = vrot.slane %v1484_v7, 4 }
 0x73d   :  { %v1486_v29 = vadd.f32 %v1485_v4, %v1484_v7 }
 0x73f   :  { %v1487_v15 = vrot.slane %v1486_v29, 2 }
 0x741   :  { %v1488_v44 = vadd.f32 %v1487_v15, %v1486_v29 }
 0x743   :  { %v1489_v48 = vrot.slane %v1488_v44, 1 }
 0x745   :  { %v1490_v63 = vadd.f32 %v1489_v48, %v1488_v44 }
 0x747   :  { %v1491_v61 = vmax.f32 %v1490_v63, 0.0 }
 0x749   :  { %1493 = vrot.lane.b32.xlu1 %v1491_v61, %s1963_s18 }
 0x7bb   :  { %v1494_v47 = vpop.permute.xlu1 %1493 }
 0x7bc   :  { %v1498_v27 = vmul.f32 %v1920_v0, %v1494_v47  ;;  %v1499_v30 = vmul.f32 %v1921_v33, %v1494_v47  ;;  %v1496_v56 = vmul.f32 %v1919_v18, %v1494_v47  ;;  %v1497_v59 = vmul.f32 %v1918_v41, %v1494_v47 }
 0x7be   :  { %1510 = vrot.lane.b32.xlu0 %v1499_v30, %s1964_s19  ;;  %1508 = vrot.lane.b32.xlu1 %v1498_v27, %s1964_s19 }
 0x7c2   :  { %1506 = vrot.lane.b32.xlu1 %v1497_v59, %s1964_s19  ;;  %1504 = vrot.lane.b32.xlu0 %v1496_v56, %s1964_s19 }
 0x830   :  { %v1511_v11 = vpop.permute.xlu0 %1510  ;;  %v1509_v26 = vpop.permute.xlu1 %1508 }
 0x831   :  { %v1525_v6 = vsel %vm853_vm6, %v1511_v11, 0.0  ;;  %v1522_v16 = vsel %vm853_vm6, %v1509_v26, 0.0 }
 0x832   :  { %1526 = vadd.xlane.f32.xlu1 %v1525_v6  ;;  %1523 = vadd.xlane.f32.xlu0 %v1522_v16 }
 0x834   :  { %v1507_v55 = vpop.permute.xlu1 %1506  ;;  %v1505_v62 = vpop.permute.xlu0 %1504 }
 0x835   :  { %v1519_v53 = vsel %vm853_vm6, %v1507_v55, 0.0  ;;  %v1516_v43 = vsel %vm853_vm6, %v1505_v62, 0.0 }
 0x836   :  { %1520 = vadd.xlane.f32.xlu0 %v1519_v53  ;;  %1517 = vadd.xlane.f32.xlu1 %v1516_v43 }
 0x84c   :  { %900 = vperm.xlu0 %1749, %v40_v54  }
 0x8bb   :  { %v1527_v31 = vpop.xlane.xlu1 %1526  ;;  %v1524_v3 = vpop.xlane.xlu0 %1523 }
 0x8bc   :  { %v1702_v32 = vmul.f32 -1.442695, %v1527_v31  ;;  %v1701_v5 = vmul.f32 -1.442695, %v1524_v3 }
 0x8be   :  { %1894 = vpow2.f32 %v1702_v32 }
 0x8bf   :  { %1896 = vpow2.f32 %v1701_v5  ;;  %v1518_v50 = vpop.xlane.xlu1 %1517  ;;  %v1521_v19 = vpop.xlane.xlu0 %1520 }
 0x8c0   :  { %v1699_v25 = vmul.f32 -1.442695, %v1518_v50  ;;  %v1700_v9 = vmul.f32 -1.442695, %v1521_v19 }
 0x8c2   :  { %1898 = vpow2.f32 %v1699_v25 }
 0x8c3   :  { %1900 = vpow2.f32 %v1700_v9 }
 0x8c7   :  { %v901_v52 = vpop.permute.xlu0 %900 }
 0x8c8   :  { %v974_v24 = vadd.f32 %v3244_v35, %v901_v52  ;;  %v976_v42 = vadd.f32 %v3245_v46, %v901_v52 }
 0x8ca   :  { %v978_v22 = vadd.f32 %v1922_v34, %v974_v24  ;;  %v979_v2 = vadd.f32 %v1923_v28, %v976_v42 }
 0x8cb   :  { %v1895_v51 = vpop.eup %1894 }
 0x8cc   :  { %v1897_v41 = vpop.eup %1896  ;;  %v1543_v60 = vadd.f32 1.0, %v1895_v51  ;;  %980 = vst [vmem:[#allocation2] sm:$0xff] %v978_v22  ;;  %981 = vst [vmem:[#allocation2 + $0x8] sm:$0xff] %v979_v2 }
 0x8cd   :  { %v1542_v18 = vadd.f32 1.0, %v1897_v41 }
 0x8ce   :  { %1902 = vrcp.f32 %v1543_v60 }
 0x8cf   :  { %v1899_v13 = vpop.eup %1898  ;;  %1904 = vrcp.f32 %v1542_v18 }
 0x8d0   :  { %v1901_v0 = vpop.eup %1900  ;;  %v1540_v10 = vadd.f32 1.0, %v1899_v13 }
 0x8d1   :  { %v1541_v36 = vadd.f32 1.0, %v1901_v0 }
 0x8d2   :  { %1906 = vrcp.f32 %v1540_v10 }
 0x8d3   :  { %1908 = vrcp.f32 %v1541_v36 }
 0x8db   :  { %v1903_v12 = vpop.eup %1902 }
 0x8dc   :  { %v1905_v8 = vpop.eup %1904  ;;  %v1559_v21 = vmul.f32 %v1903_v12, %v3075_v17  ;;  %v1558_v39 = vmul.f32 %v1903_v12, %v3073_v49 }
 0x8dd   :  { %v1557_v20 = vmul.f32 %v1905_v8, %v3069_v57  ;;  %v1556_v23 = vmul.f32 %v1905_v8, %v3067_v58  ;;  %v1924_v57 = vld [vmem:[%s3140_s3] sm:$0xff]  ;;  %s1927_s3 = scalar_lea.vmem %s1642_s24, 512 }
 0x8de   :  { %1584 = vmatprep.subr.mxu0 %v1559_v21  ;;  %p1928_p0 = scmp.ne.s32.totalorder %s1642_s24, %s1927_s3  ;;  %p1933_p2 = scmp.lt.s32.totalorder %s1927_s3, %s1927_s3 }
 0x8df   :  { %v1907_v33 = vpop.eup %1906  ;;  %1585 = vmatpush1.msra.mxu0 %v1558_v39 }
 0x8e0   :  { %v1909_v40 = vpop.eup %1908  ;;  %1586 = vmatprep.subr.mxu0 %v1557_v20  ;;  %v1553_v4 = vmul.f32 %v1907_v33, %v3055_v45  ;;  %v1552_v49 = vmul.f32 %v1907_v33, %v3052_v37  ;;  %v1925_v45 = vld [vmem:[%s3137_s0 + $0x10] sm:$0xff]  ;;  %v1926_v37 = vld [vmem:[%s3137_s0 + $0x18] sm:$0xff]  ;;  %p1934_p3 = por %p1933_p2, %p1932_p1 }
 0x8e1   :  { %1587 = vmatpush1.msra.mxu0 %v1556_v23  ;;  %v1555_v38 = vmul.f32 %v1909_v40, %v3063_v1  ;;  %v1554_v7 = vmul.f32 %v1909_v40, %v3060_v14 }
 0x8e2   :  { %p1935_p4 = pnand %p1934_p3, %p1928_p0 }
 0x8e3   :  { %1588 = vmatprep.subr.mxu0 %v1555_v38 }
 0x8e4   :  { %1589 = vmatpush1.msra.mxu0 %v1554_v7 }
 0x8e5   :  { %1590 = vmatprep.subr.mxu0 %v1553_v4 }
 0x8e6   :  { %1591 = vmatpush1.msra.mxu0 %v1552_v49 }
 0x8e7   :  { %1703 = vmatmul.mubr.msk.f32.vlgmr.msra.gmra.mxu0 %vm903_vm7, %v1924_v57 }
 0x9a7   :  { %v1626_v58 = vpop.f32.mrf.mxu0 }
 0x9a8   :  { %v1627_v17 = vadd.f32 %v1626_v58, %v901_v52 }
 0x9a9   :  { %v1628_v29 = vpop.f32.mrf.mxu0 }
 0x9aa   :  { %v1631_v14 = vadd.f32 %v1925_v45, %v1627_v17  ;;  %v1629_v1 = vadd.f32 %v1628_v29, %v901_v52 }
 0x9ac   :  { %1634 = vst [vmem:[#allocation2 + $0x10] sm:$0xff] %v1631_v14  ;;  %v1632_v15 = vadd.f32 %v1926_v37, %v1629_v1 }
 0x9ae   :  { %1635 = vst [vmem:[#allocation2 + $0x18] sm:$0xff] %v1632_v15 }
 0x9af   :  { %1938 = shalt.err (!%p1935_p4)
}
 0x9b0   :  { %s1966_s30 = smov 256  }
 0x9b1   :  { %1647 = dma.vmem_to_hbm [thread:$0]  %s1642_s24, 512, %s3144_s7, [#allocation3], %s1966_s30, %s1966_s30, %s1961_s6  }
 0x9b2   :  { %1947 = dma.done.wait [#allocation3], 512  }
 0x9b3   :  { %1948 = vsyncadd [#allocation3], 4294966784 }
 0x9b4   :  { %1651 = vsyncpa [#allocation3], 1 }

</bundles_post_ra>
